<compile_context>
chip_gen: v7x
topology: tpu7x:2x2x1
jax: 0.10.0
libtpu: 0.0.40
codegen_flags: <defaults>
</compile_context>

<pallas_src>
import jax
import jax.numpy as jnp
from jax.experimental import pallas as pl
from jax.experimental.pallas import tpu as pltpu

DATA_DIM = 2
HIDDEN_DIM = 128          # module default
N_HIDDEN_LAYERS = 2
BN_EPS = 1e-5

# Column layout of the packed per-feature slab  vec[H, 10]
_B_IN, _G_IN, _BE_IN = 0, 1, 2
_B_H0, _G_H0, _BE_H0 = 3, 4, 5
_B_H1, _G_H1, _BE_H1 = 6, 7, 8
_B_OUT = 9
N_VEC_COLS = 10


def _vmem_limit_bytes() -> int:
    """Generation-aware scoped-VMEM limit: ~13/16 of physical per-core VMEM.
    v5e/v6e (128 MiB) -> ~104 MiB; v7x (64 MiB) -> ~52 MiB."""
    try:
        cap = int(pltpu.get_tpu_info().vmem_capacity_bytes)
    except Exception:
        cap = 64 * 1024 * 1024            # conservative fallback (v7x-sized)
    return max(32 * 1024 * 1024, (cap * 13) // 16)


def _bn_relu(z, gamma, beta):
    """Training-mode BatchNorm1d + ReLU on [F, B] f32 activations (batch on lanes).

    Two-pass variance (center, then square) -> no E[z^2]-E[z]^2 cancellation; the centered
    tensor is reused for the normalization so only one extra [F, B] temporary is live.
    """
    inv_b = 1.0 / z.shape[1]
    mean = jnp.sum(z, axis=1, keepdims=True) * inv_b            # [F, 1]
    centered = z - mean                                         # [F, B]
    # TODO(synk): for very large B, accumulate sum/sumsq over lane chunks to cap temporaries.
    var = jnp.sum(centered * centered, axis=1, keepdims=True) * inv_b   # biased batch var
    scale = gamma * jax.lax.rsqrt(var + BN_EPS)                 # fold BN -> scale/shift
    return jnp.maximum(centered * scale + beta, 0.0)


def score_mlp_kernel(x_ref, t_ref, w_in_ref, w_hid_ref, w_out_ref, vec_ref, o_ref):
    x = x_ref[...]            # [D, B]  f32, batch on lanes
    t = t_ref[...]            # [1, B]  f32
    vec = vec_ref[...]        # [H, 10] f32 per-feature slab

    # ---- input layer: Linear(D+1 -> H) on the VPU (K=3 is far too small for the MXU) ----
    z = vec[:, _B_IN:_B_IN + 1] + w_in_ref[:, DATA_DIM:DATA_DIM + 1] * t   # bias + w_t * t
    for d in range(DATA_DIM):                                              # static unroll
        z = z + w_in_ref[:, d:d + 1] * x[d:d + 1, :]                       # broadcast FMA
    h = _bn_relu(z, vec[:, _G_IN:_G_IN + 1], vec[:, _BE_IN:_BE_IN + 1])
    h = h.astype(jnp.bfloat16)                                             # bf16 MXU operand

    # ---- hidden layer 0: Linear -> BN -> ReLU (bf16 x bf16 -> f32 on the MXU) ----
    z = (jnp.dot(w_hid_ref[0], h, preferred_element_type=jnp.float32)
         + vec[:, _B_H0:_B_H0 + 1])
    h = _bn_relu(z, vec[:, _G_H0:_G_H0 + 1], vec[:, _BE_H0:_BE_H0 + 1])
    h = h.astype(jnp.bfloat16)

    # ---- hidden layer 1: Linear -> BN -> ReLU ----
    z = (jnp.dot(w_hid_ref[1], h, preferred_element_type=jnp.float32)
         + vec[:, _B_H1:_B_H1 + 1])
    h = _bn_relu(z, vec[:, _G_H1:_G_H1 + 1], vec[:, _BE_H1:_BE_H1 + 1])
    h = h.astype(jnp.bfloat16)

    # ---- output layer: Linear(H -> D), lane-dense [D, B] store ----
    b_out = vec[:DATA_DIM, _B_OUT:_B_OUT + 1]         # [D, 1]
    o_ref[...] = (jnp.dot(w_out_ref[...], h, preferred_element_type=jnp.float32)
                  + b_out).astype(o_ref.dtype)


@jax.jit
def score_model_forward(x, t, w_in, w_hid, w_out, vec):
    """x: [B, D], t: [B]  ->  [B, D]   (matches FullConnectedScoreModel.forward)."""
    batch = x.shape[0]
    x_t = x.astype(jnp.float32).T                     # [D, B]  lane-dense
    t_row = t.astype(jnp.float32)[None, :]            # [1, B]
    out_t = pl.pallas_call(
        score_mlp_kernel,
        out_shape=jax.ShapeDtypeStruct((DATA_DIM, batch), jnp.float32),
        in_specs=[pl.BlockSpec(memory_space=pltpu.MemorySpace.VMEM)] * 6,
        out_specs=pl.BlockSpec(memory_space=pltpu.MemorySpace.VMEM),
        compiler_params=pltpu.CompilerParams(vmem_limit_bytes=_vmem_limit_bytes()),
    )(x_t, t_row, w_in, w_hid, w_out, vec)
    return out_t.T                                    # [B, D]


def _linear_init(key, fan_out, fan_in):
    """PyTorch nn.Linear init: weight [out, in], U(-1/sqrt(in), 1/sqrt(in))."""
    kw, kb = jax.random.split(key)
    bound = 1.0 / float(fan_in) ** 0.5
    w = jax.random.uniform(kw, (fan_out, fan_in), jnp.float32, -bound, bound)
    b = jax.random.uniform(kb, (fan_out,), jnp.float32, -bound, bound)
    return w, b


def init_params(key, data_dim=DATA_DIM, hidden_dim=HIDDEN_DIM,
                n_hidden_layers=N_HIDDEN_LAYERS):
    assert data_dim == DATA_DIM and n_hidden_layers == N_HIDDEN_LAYERS
    keys = jax.random.split(key, n_hidden_layers + 2)
    w_in, b_in = _linear_init(keys[0], hidden_dim, data_dim + 1)   # [H, D+1]  stays f32 (VPU)
    w_h0, b_h0 = _linear_init(keys[1], hidden_dim, hidden_dim)     # [H, H]
    w_h1, b_h1 = _linear_init(keys[2], hidden_dim, hidden_dim)     # [H, H]
    w_out, b_out = _linear_init(keys[3], data_dim, hidden_dim)     # [D, H]

    w_hid = jnp.stack([w_h0, w_h1]).astype(jnp.bfloat16)           # [2, H, H] bf16 MXU slab
    w_out = w_out.astype(jnp.bfloat16)                             # [D, H]    bf16 MXU

    vec = jnp.zeros((hidden_dim, N_VEC_COLS), jnp.float32)         # [H, 10] f32 slab
    vec = vec.at[:, _B_IN].set(b_in)
    vec = vec.at[:, _G_IN].set(1.0)     # gamma = 1, beta column stays 0
    vec = vec.at[:, _B_H0].set(b_h0)
    vec = vec.at[:, _G_H0].set(1.0)
    vec = vec.at[:, _B_H1].set(b_h1)
    vec = vec.at[:, _G_H1].set(1.0)
    vec = vec.at[:data_dim, _B_OUT].set(b_out)
    return w_in, w_hid, w_out, vec


def reference_forward(x, t, w_in, w_hid, w_out, vec):
    """Pure-JAX mirror of the kernel (BN train mode, bf16 matmul operands), [B, F] layout."""
    h = jnp.concatenate([x, t[:, None]], axis=1).astype(jnp.float32)

    def bn_relu(z, g, be):
        m = jnp.mean(z, axis=0, keepdims=True)
        v = jnp.mean((z - m) ** 2, axis=0, keepdims=True)
        return jnp.maximum((z - m) / jnp.sqrt(v + BN_EPS) * g + be, 0.0)

    z = h @ w_in.T + vec[:, _B_IN]
    h = bn_relu(z, vec[:, _G_IN], vec[:, _BE_IN]).astype(jnp.bfloat16)
    z = jnp.dot(h, w_hid[0].T, preferred_element_type=jnp.float32) + vec[:, _B_H0]
    h = bn_relu(z, vec[:, _G_H0], vec[:, _BE_H0]).astype(jnp.bfloat16)
    z = jnp.dot(h, w_hid[1].T, preferred_element_type=jnp.float32) + vec[:, _B_H1]
    h = bn_relu(z, vec[:, _G_H1], vec[:, _BE_H1]).astype(jnp.bfloat16)
    return jnp.dot(h, w_out.T, preferred_element_type=jnp.float32) + vec[:DATA_DIM, _B_OUT]


if __name__ == "__main__":
    key = jax.random.PRNGKey(0)
    k_param, k_x, k_t = jax.random.split(key, 3)

    batch = 128   # multiple of 128 keeps the batch (lane) axis fully dense
    params = init_params(k_param)
    x = jax.random.normal(k_x, (batch, DATA_DIM), jnp.float32)
    t = jax.random.uniform(k_t, (batch,), jnp.float32)

    out = jax.block_until_ready(score_model_forward(x, t, *params))
    ref = reference_forward(x, t, *params)

    assert out.shape == (batch, DATA_DIM)
    assert jnp.allclose(out, ref, atol=1e-2, rtol=1e-2), "mismatch vs JAX reference"

    print("KERNEL_OK")
</pallas_src>

<mosaic_0001>
module attributes {stable_mosaic.version = 11 : i64} {
  func.func @score_mlp_kernel(%arg0: memref<2x128xf32, #tpu.memory_space<vmem>>, %arg1: memref<1x128xf32, #tpu.memory_space<vmem>>, %arg2: memref<128x3xf32, #tpu.memory_space<vmem>>, %arg3: memref<2x128x128xbf16, #tpu.memory_space<vmem>>, %arg4: memref<2x128xbf16, #tpu.memory_space<vmem>>, %arg5: memref<128x10xf32, #tpu.memory_space<vmem>>, %arg6: memref<2x128xf32, #tpu.memory_space<vmem>>) attributes {dimension_semantics = [], scalar_prefetch = 0 : i64, scratch_operands = 0 : i64, tpu.core_type = #tpu.core_type<tc>} {
    %c0 = arith.constant 0 : index
    %c0_0 = arith.constant 0 : index
    %0 = vector.load %arg0[%c0, %c0_0] : memref<2x128xf32, #tpu.memory_space<vmem>>, vector<2x128xf32>
    %c0_1 = arith.constant 0 : index
    %c0_2 = arith.constant 0 : index
    %1 = vector.load %arg1[%c0_1, %c0_2] : memref<1x128xf32, #tpu.memory_space<vmem>>, vector<1x128xf32>
    %c0_3 = arith.constant 0 : index
    %c0_4 = arith.constant 0 : index
    %2 = vector.load %arg5[%c0_3, %c0_4] : memref<128x10xf32, #tpu.memory_space<vmem>>, vector<128x10xf32>
    %3 = vector.extract_strided_slice %2 {offsets = [0, 0], sizes = [128, 1], strides = [1, 1]} : vector<128x10xf32> to vector<128x1xf32>
    %c0_5 = arith.constant 0 : index
    %c2 = arith.constant 2 : index
    %4 = vector.load %arg2[%c0_5, %c2] : memref<128x3xf32, #tpu.memory_space<vmem>>, vector<128x1xf32>
    %5 = vector.broadcast %4 : vector<128x1xf32> to vector<128x128xf32>
    %6 = vector.broadcast %1 : vector<1x128xf32> to vector<128x128xf32>
    %7 = arith.mulf %5, %6 : vector<128x128xf32>
    %8 = vector.broadcast %3 : vector<128x1xf32> to vector<128x128xf32>
    %9 = arith.addf %8, %7 : vector<128x128xf32>
    %c0_6 = arith.constant 0 : index
    %c0_7 = arith.constant 0 : index
    %10 = vector.load %arg2[%c0_6, %c0_7] : memref<128x3xf32, #tpu.memory_space<vmem>>, vector<128x1xf32>
    %11 = vector.extract_strided_slice %0 {offsets = [0, 0], sizes = [1, 128], strides = [1, 1]} : vector<2x128xf32> to vector<1x128xf32>
    %12 = vector.broadcast %10 : vector<128x1xf32> to vector<128x128xf32>
    %13 = vector.broadcast %11 : vector<1x128xf32> to vector<128x128xf32>
    %14 = arith.mulf %12, %13 : vector<128x128xf32>
    %15 = arith.addf %9, %14 : vector<128x128xf32>
    %c0_8 = arith.constant 0 : index
    %c1 = arith.constant 1 : index
    %16 = vector.load %arg2[%c0_8, %c1] : memref<128x3xf32, #tpu.memory_space<vmem>>, vector<128x1xf32>
    %17 = vector.extract_strided_slice %0 {offsets = [1, 0], sizes = [1, 128], strides = [1, 1]} : vector<2x128xf32> to vector<1x128xf32>
    %18 = vector.broadcast %16 : vector<128x1xf32> to vector<128x128xf32>
    %19 = vector.broadcast %17 : vector<1x128xf32> to vector<128x128xf32>
    %20 = arith.mulf %18, %19 : vector<128x128xf32>
    %21 = arith.addf %15, %20 : vector<128x128xf32>
    %22 = vector.extract_strided_slice %2 {offsets = [0, 1], sizes = [128, 1], strides = [1, 1]} : vector<128x10xf32> to vector<128x1xf32>
    %23 = vector.extract_strided_slice %2 {offsets = [0, 2], sizes = [128, 1], strides = [1, 1]} : vector<128x10xf32> to vector<128x1xf32>
    %cst = arith.constant dense<0.000000e+00> : vector<128xf32>
    %24 = vector.multi_reduction <add>, %21, %cst [1] : vector<128x128xf32> to vector<128xf32>
    %25 = vector.shape_cast %24 : vector<128xf32> to vector<128x1xf32>
    %cst_9 = arith.constant 7.812500e-03 : f32
    %26 = vector.broadcast %cst_9 : f32 to vector<128x1xf32>
    %27 = arith.mulf %25, %26 : vector<128x1xf32>
    %28 = vector.broadcast %27 : vector<128x1xf32> to vector<128x128xf32>
    %29 = arith.subf %21, %28 : vector<128x128xf32>
    %30 = arith.mulf %29, %29 : vector<128x128xf32>
    %cst_10 = arith.constant dense<0.000000e+00> : vector<128xf32>
    %31 = vector.multi_reduction <add>, %30, %cst_10 [1] : vector<128x128xf32> to vector<128xf32>
    %32 = vector.shape_cast %31 : vector<128xf32> to vector<128x1xf32>
    %cst_11 = arith.constant 7.812500e-03 : f32
    %33 = vector.broadcast %cst_11 : f32 to vector<128x1xf32>
    %34 = arith.mulf %32, %33 : vector<128x1xf32>
    %cst_12 = arith.constant 9.99999974E-6 : f32
    %35 = vector.broadcast %cst_12 : f32 to vector<128x1xf32>
    %36 = arith.addf %34, %35 : vector<128x1xf32>
    %37 = math.rsqrt %36 : vector<128x1xf32>
    %38 = arith.mulf %22, %37 : vector<128x1xf32>
    %39 = vector.broadcast %38 : vector<128x1xf32> to vector<128x128xf32>
    %40 = arith.mulf %29, %39 : vector<128x128xf32>
    %41 = vector.broadcast %23 : vector<128x1xf32> to vector<128x128xf32>
    %42 = arith.addf %40, %41 : vector<128x128xf32>
    %cst_13 = arith.constant 0.000000e+00 : f32
    %43 = vector.broadcast %cst_13 : f32 to vector<128x128xf32>
    %44 = arith.maximumf %42, %43 : vector<128x128xf32>
    %45 = arith.truncf %44 : vector<128x128xf32> to vector<128x128xbf16>
    %c0_14 = arith.constant 0 : index
    %c0_15 = arith.constant 0 : index
    %c0_16 = arith.constant 0 : index
    %46 = vector.load %arg3[%c0_14, %c0_15, %c0_16] : memref<2x128x128xbf16, #tpu.memory_space<vmem>>, vector<1x128x128xbf16>
    %47 = vector.shape_cast %46 : vector<1x128x128xbf16> to vector<128x128xbf16>
    %cst_17 = arith.constant dense<0.000000e+00> : vector<128x128xf32>
    %48 = tpu.matmul %47, %45, %cst_17 {dimension_numbers = #tpu.dot_dimension_numbers<[1], [0], [0], [1], [0, 0, 1, 1], [], []>} : vector<128x128xbf16>, vector<128x128xbf16>, vector<128x128xf32> -> vector<128x128xf32>
    %49 = vector.extract_strided_slice %2 {offsets = [0, 3], sizes = [128, 1], strides = [1, 1]} : vector<128x10xf32> to vector<128x1xf32>
    %50 = vector.broadcast %49 : vector<128x1xf32> to vector<128x128xf32>
    %51 = arith.addf %48, %50 : vector<128x128xf32>
    %52 = vector.extract_strided_slice %2 {offsets = [0, 4], sizes = [128, 1], strides = [1, 1]} : vector<128x10xf32> to vector<128x1xf32>
    %53 = vector.extract_strided_slice %2 {offsets = [0, 5], sizes = [128, 1], strides = [1, 1]} : vector<128x10xf32> to vector<128x1xf32>
    %cst_18 = arith.constant dense<0.000000e+00> : vector<128xf32>
    %54 = vector.multi_reduction <add>, %51, %cst_18 [1] : vector<128x128xf32> to vector<128xf32>
    %55 = vector.shape_cast %54 : vector<128xf32> to vector<128x1xf32>
    %cst_19 = arith.constant 7.812500e-03 : f32
    %56 = vector.broadcast %cst_19 : f32 to vector<128x1xf32>
    %57 = arith.mulf %55, %56 : vector<128x1xf32>
    %58 = vector.broadcast %57 : vector<128x1xf32> to vector<128x128xf32>
    %59 = arith.subf %51, %58 : vector<128x128xf32>
    %60 = arith.mulf %59, %59 : vector<128x128xf32>
    %cst_20 = arith.constant dense<0.000000e+00> : vector<128xf32>
    %61 = vector.multi_reduction <add>, %60, %cst_20 [1] : vector<128x128xf32> to vector<128xf32>
    %62 = vector.shape_cast %61 : vector<128xf32> to vector<128x1xf32>
    %cst_21 = arith.constant 7.812500e-03 : f32
    %63 = vector.broadcast %cst_21 : f32 to vector<128x1xf32>
    %64 = arith.mulf %62, %63 : vector<128x1xf32>
    %cst_22 = arith.constant 9.99999974E-6 : f32
    %65 = vector.broadcast %cst_22 : f32 to vector<128x1xf32>
    %66 = arith.addf %64, %65 : vector<128x1xf32>
    %67 = math.rsqrt %66 : vector<128x1xf32>
    %68 = arith.mulf %52, %67 : vector<128x1xf32>
    %69 = vector.broadcast %68 : vector<128x1xf32> to vector<128x128xf32>
    %70 = arith.mulf %59, %69 : vector<128x128xf32>
    %71 = vector.broadcast %53 : vector<128x1xf32> to vector<128x128xf32>
    %72 = arith.addf %70, %71 : vector<128x128xf32>
    %cst_23 = arith.constant 0.000000e+00 : f32
    %73 = vector.broadcast %cst_23 : f32 to vector<128x128xf32>
    %74 = arith.maximumf %72, %73 : vector<128x128xf32>
    %75 = arith.truncf %74 : vector<128x128xf32> to vector<128x128xbf16>
    %c1_24 = arith.constant 1 : index
    %c0_25 = arith.constant 0 : index
    %c0_26 = arith.constant 0 : index
    %76 = vector.load %arg3[%c1_24, %c0_25, %c0_26] : memref<2x128x128xbf16, #tpu.memory_space<vmem>>, vector<1x128x128xbf16>
    %77 = vector.shape_cast %76 : vector<1x128x128xbf16> to vector<128x128xbf16>
    %cst_27 = arith.constant dense<0.000000e+00> : vector<128x128xf32>
    %78 = tpu.matmul %77, %75, %cst_27 {dimension_numbers = #tpu.dot_dimension_numbers<[1], [0], [0], [1], [0, 0, 1, 1], [], []>} : vector<128x128xbf16>, vector<128x128xbf16>, vector<128x128xf32> -> vector<128x128xf32>
    %79 = vector.extract_strided_slice %2 {offsets = [0, 6], sizes = [128, 1], strides = [1, 1]} : vector<128x10xf32> to vector<128x1xf32>
    %80 = vector.broadcast %79 : vector<128x1xf32> to vector<128x128xf32>
    %81 = arith.addf %78, %80 : vector<128x128xf32>
    %82 = vector.extract_strided_slice %2 {offsets = [0, 7], sizes = [128, 1], strides = [1, 1]} : vector<128x10xf32> to vector<128x1xf32>
    %83 = vector.extract_strided_slice %2 {offsets = [0, 8], sizes = [128, 1], strides = [1, 1]} : vector<128x10xf32> to vector<128x1xf32>
    %cst_28 = arith.constant dense<0.000000e+00> : vector<128xf32>
    %84 = vector.multi_reduction <add>, %81, %cst_28 [1] : vector<128x128xf32> to vector<128xf32>
    %85 = vector.shape_cast %84 : vector<128xf32> to vector<128x1xf32>
    %cst_29 = arith.constant 7.812500e-03 : f32
    %86 = vector.broadcast %cst_29 : f32 to vector<128x1xf32>
    %87 = arith.mulf %85, %86 : vector<128x1xf32>
    %88 = vector.broadcast %87 : vector<128x1xf32> to vector<128x128xf32>
    %89 = arith.subf %81, %88 : vector<128x128xf32>
    %90 = arith.mulf %89, %89 : vector<128x128xf32>
    %cst_30 = arith.constant dense<0.000000e+00> : vector<128xf32>
    %91 = vector.multi_reduction <add>, %90, %cst_30 [1] : vector<128x128xf32> to vector<128xf32>
    %92 = vector.shape_cast %91 : vector<128xf32> to vector<128x1xf32>
    %cst_31 = arith.constant 7.812500e-03 : f32
    %93 = vector.broadcast %cst_31 : f32 to vector<128x1xf32>
    %94 = arith.mulf %92, %93 : vector<128x1xf32>
    %cst_32 = arith.constant 9.99999974E-6 : f32
    %95 = vector.broadcast %cst_32 : f32 to vector<128x1xf32>
    %96 = arith.addf %94, %95 : vector<128x1xf32>
    %97 = math.rsqrt %96 : vector<128x1xf32>
    %98 = arith.mulf %82, %97 : vector<128x1xf32>
    %99 = vector.broadcast %98 : vector<128x1xf32> to vector<128x128xf32>
    %100 = arith.mulf %89, %99 : vector<128x128xf32>
    %101 = vector.broadcast %83 : vector<128x1xf32> to vector<128x128xf32>
    %102 = arith.addf %100, %101 : vector<128x128xf32>
    %cst_33 = arith.constant 0.000000e+00 : f32
    %103 = vector.broadcast %cst_33 : f32 to vector<128x128xf32>
    %104 = arith.maximumf %102, %103 : vector<128x128xf32>
    %105 = arith.truncf %104 : vector<128x128xf32> to vector<128x128xbf16>
    %106 = vector.extract_strided_slice %2 {offsets = [0, 9], sizes = [2, 1], strides = [1, 1]} : vector<128x10xf32> to vector<2x1xf32>
    %c0_34 = arith.constant 0 : index
    %c0_35 = arith.constant 0 : index
    %107 = vector.load %arg4[%c0_34, %c0_35] : memref<2x128xbf16, #tpu.memory_space<vmem>>, vector<2x128xbf16>
    %cst_36 = arith.constant dense<0.000000e+00> : vector<2x128xf32>
    %108 = tpu.matmul %107, %105, %cst_36 {dimension_numbers = #tpu.dot_dimension_numbers<[1], [0], [0], [1], [0, 0, 1, 1], [], []>} : vector<2x128xbf16>, vector<128x128xbf16>, vector<2x128xf32> -> vector<2x128xf32>
    %109 = vector.broadcast %106 : vector<2x1xf32> to vector<2x128xf32>
    %110 = arith.addf %108, %109 : vector<2x128xf32>
    %c0_37 = arith.constant 0 : index
    %c0_38 = arith.constant 0 : index
    %111 = vector.load %arg6[%c0_37, %c0_38] : memref<2x128xf32, #tpu.memory_space<vmem>>, vector<2x128xf32>
    tpu.vector_store %arg6[%c0_37, %c0_38], %110 {strides = array<i32>} : memref<2x128xf32, #tpu.memory_space<vmem>>, vector<2x128xf32>,
    return
  }
}

</mosaic_0001>

<bundles_post_ra>
// kernel: score_model_forward.1
= control target key start
LH: loop header
LB: loop body
LE: loop exit
PB: predicated region body
PF: predicated region fallthrough
CT: control target
= control target key end

     0   :  { %v2487_v2 = vmov 0   ;;  %v2488_v3 = vmov 2   ;;  %v2489_v11 = vmov 1   ;;  %s3609_s0 = inlined_call_operand.vmem [shape: f32[2,128], index: 0, kind: input, shape index: {}]   ;;  %s3610_s1 = inlined_call_operand.vmem [shape: f32[1,128], index: 1, kind: input, shape index: {}]   ;;  %s3611_s2 = inlined_call_operand.vmem [shape: f32[128,3], index: 2, kind: input, shape index: {}]   ;;  %s3612_s3 = inlined_call_operand.vmem [shape: bf16[2,128,128], index: 3, kind: input, shape index: {}]   ;;  %s3613_s4 = inlined_call_operand.vmem [shape: bf16[2,128], index: 4, kind: input, shape index: {}]   ;;  %s3614_s5 = inlined_call_operand.vmem [shape: f32[128,10], index: 5, kind: input, shape index: {}]   ;;  %s3615_s6 = inlined_call_operand.hbm [shape: f32[2,128], index: 6, kind: output, shape index: {}]  }
   0x1   :  { %v43_v0 = vld [vmem:[%s3611_s2] sm:$0xff]  ;;  %2268 = vset.pattern.permute.xlu1 %v2487_v2  ;;  %2267 = vset.pattern.permute.xlu0 %v2488_v3  ;;  %v44_v4 = vld [vmem:[%s3611_s2 + $0x8] sm:$0xff]  ;;  %v46_v6 = vld [vmem:[%s3611_s2 + $0x18] sm:$0xff] }
   0x2   :  { %v2541_v1 = vld [vmem:[%s3614_s5] sm:$0xff]  ;;  %61 = vperm.xlu0 %2267, %v43_v0   ;;  %v2552_v5 = vld [vmem:[%s3614_s5 + $0x8] sm:$0xff]  ;;  %v45_v8 = vld [vmem:[%s3611_s2 + $0x10] sm:$0xff] }
   0x3   :  { %163 = vperm.xlu1 %2268, %v2541_v1   ;;  %v48_v7 = vld [vmem:[%s3611_s2 + $0x28] sm:$0xff]  ;;  %v2568_v9 = vld [vmem:[%s3611_s2 + $0x38] sm:$0xff] }
   0x4   :  { %v2573_v10 = vld [vmem:[%s3611_s2 + $0x48] sm:$0xff] }
   0x6   :  { %66 = vperm.xlu0 %2267, %v44_v4  }
   0x7   :  { %168 = vperm.xlu1 %2268, %v2552_v5  }
   0xa   :  { %76 = vperm.xlu0 %2267, %v46_v6  }
   0xb   :  { %262 = vperm.xlu1 %2268, %v44_v4  }
   0xe   :  { %86 = vperm.xlu0 %2267, %v48_v7  }
   0xf   :  { %2269 = vset.pattern.permute.xlu1 %v2488_v3 }
  0x10   :  { %71 = vperm.xlu1 %2269, %v45_v8  }
  0x12   :  { %96 = vperm.xlu0 %2267, %v2568_v9  }
  0x14   :  { %2270 = vset.pattern.permute.xlu1 %v2489_v11 }
  0x15   :  { %358 = vperm.xlu1 %2270, %v43_v0  }
  0x16   :  { %11 = vsyncpa [#allocation3], 0  ;;  %106 = vperm.xlu0 %2267, %v2573_v10   ;;  %v2581_v12 = vld [vmem:[%s3611_s2 + $0x58] sm:$0xff]  ;;  %v2592_v14 = vld [vmem:[%s3611_s2 + $0x68] sm:$0xff]  ;;  %v321_v34 = vlaneseq  ;;  %vm2497_vm0 = vmmov 0   ;;  %s2499_s23 = smov [#allocation2]  }
  0x17   :  { %v2587_v13 = vld [vmem:[%s3614_s5 + $0x18] sm:$0xff]  ;;  %v47_v16 = vld [vmem:[%s3611_s2 + $0x20] sm:$0xff]  ;;  %v2608_v17 = vld [vmem:[%s3614_s5 + $0x10] sm:$0xff] }
  0x18   :  { %v58_v15 = vld [vmem:[%s3611_s2 + $0x78] sm:$0xff]  ;;  %v2615_v18 = vld [vmem:[%s3614_s5 + $0x20] sm:$0xff]  ;;  %v2620_v19 = vld [vmem:[%s3614_s5 + $0x28] sm:$0xff]  ;;  %v322_v37 = vshrl.u32 %v321_v34, 7 }
  0x19   :  { %362 = vperm.xlu1 %2270, %v44_v4   ;;  %v2628_v20 = vld [vmem:[%s3614_s5 + $0x30] sm:$0xff]  ;;  %v2639_v22 = vld [vmem:[%s3614_s5 + $0x40] sm:$0xff]  ;;  %v2647_v23 = vld [vmem:[%s3614_s5 + $0x38] sm:$0xff] }
  0x1a   :  { %116 = vperm.xlu0 %2267, %v2581_v12   ;;  %v49_v21 = vld [vmem:[%s3611_s2 + $0x30] sm:$0xff]  ;;  %v2661_v25 = vld [vmem:[%s3614_s5 + $0x60] sm:$0xff]  ;;  %v2680_v28 = vld [vmem:[%s3614_s5 + $0x48] sm:$0xff]  ;;  %v323_v40 = vsub.s32 0, %v322_v37  ;;  %v423_v49 = vsub.s32 1, %v322_v37 }
  0x1b   :  { %v2652_v24 = vld [vmem:[%s3614_s5 + $0x50] sm:$0xff]  ;;  %v51_v26 = vld [vmem:[%s3611_s2 + $0x40] sm:$0xff]  ;;  %v2695_v30 = vld [vmem:[%s3614_s5 + $0x58] sm:$0xff] }
  0x1c   :  { %v2673_v27 = vld [vmem:[%s3614_s5 + $0x70] sm:$0xff]  ;;  %v55_v31 = vld [vmem:[%s3611_s2 + $0x60] sm:$0xff]  ;;  %v2715_v43 = vld [vmem:[%s3614_s5 + $0x68] sm:$0xff] }
  0x1d   :  { %2271 = vset.pattern.permute.xlu1 %v2487_v2  ;;  %v53_v29 = vld [vmem:[%s3611_s2 + $0x50] sm:$0xff]  ;;  %v25_v41 = vld [vmem:[%s3609_s0] sm:$0x3]  ;;  %v2757_v4 = vld [vmem:[%s3614_s5 + $0x78] sm:$0xff] }
  0x1e   :  { %178 = vperm.xlu1 %2271, %v2587_v13   ;;  %126 = vperm.xlu0 %2267, %v2592_v14   ;;  %v2720_v45 = vrot.slane %v25_v41, %v323_v40  ;;  %v2726_v46 = vld [vmem:[%s3610_s1] ss:$0 sm:$0xff]  ;;  %v2736_v54 = vrot.slane %v25_v41, %v423_v49  ;;  %v57_v55 = vld [vmem:[%s3611_s2 + $0x70] sm:$0xff] }
  0x22   :  { %266 = vperm.xlu1 %2271, %v45_v8   ;;  %136 = vperm.xlu0 %2267, %v58_v15  }
  0x26   :  { %2272 = vset.pattern.permute.xlu1 %v2488_v3  ;;  %2288 = vset.pattern.permute.xlu0 %v2487_v2 }
  0x27   :  { %81 = vperm.xlu1 %2272, %v47_v16   ;;  %258 = vperm.xlu0 %2288, %v43_v0  }
  0x2b   :  { %2273 = vset.pattern.permute.xlu1 %v2489_v11  ;;  %173 = vperm.xlu0 %2288, %v2608_v17  }
  0x2c   :  { %366 = vperm.xlu1 %2273, %v45_v8  }
  0x2f   :  { %270 = vperm.xlu0 %2288, %v46_v6  }
  0x30   :  { %370 = vperm.xlu1 %2273, %v46_v6  }
  0x33   :  { %183 = vperm.xlu0 %2288, %v2615_v18  }
  0x34   :  { %2274 = vset.pattern.permute.xlu1 %v2487_v2 }
  0x35   :  { %188 = vperm.xlu1 %2274, %v2620_v19  }
  0x37   :  { %278 = vperm.xlu0 %2288, %v48_v7  }
  0x39   :  { %274 = vperm.xlu1 %2274, %v47_v16  }
  0x3b   :  { %193 = vperm.xlu0 %2288, %v2628_v20  }
  0x3d   :  { %2275 = vset.pattern.permute.xlu1 %v2488_v3 }
  0x3e   :  { %91 = vperm.xlu1 %2275, %v49_v21  }
  0x3f   :  { %286 = vperm.xlu0 %2288, %v2568_v9  }
  0x42   :  { %2276 = vset.pattern.permute.xlu1 %v2489_v11 }
  0x43   :  { %374 = vperm.xlu1 %2276, %v47_v16   ;;  %203 = vperm.xlu0 %2288, %v2639_v22  }
  0x47   :  { %378 = vperm.xlu1 %2276, %v48_v7   ;;  %294 = vperm.xlu0 %2288, %v2573_v10  }
  0x4b   :  { %2277 = vset.pattern.permute.xlu1 %v2487_v2  ;;  %213 = vperm.xlu0 %2288, %v2652_v24  }
  0x4c   :  { %198 = vperm.xlu1 %2277, %v2647_v23  }
  0x4f   :  { %302 = vperm.xlu0 %2288, %v2581_v12  }
  0x50   :  { %282 = vperm.xlu1 %2277, %v49_v21  }
  0x53   :  { %223 = vperm.xlu0 %2288, %v2661_v25  }
  0x54   :  { %2278 = vset.pattern.permute.xlu1 %v2488_v3 }
  0x55   :  { %101 = vperm.xlu1 %2278, %v51_v26  }
  0x57   :  { %310 = vperm.xlu0 %2288, %v2592_v14  }
  0x59   :  { %2279 = vset.pattern.permute.xlu1 %v2489_v11 }
  0x5a   :  { %382 = vperm.xlu1 %2279, %v49_v21  }
  0x5b   :  { %233 = vperm.xlu0 %2288, %v2673_v27  }
  0x5e   :  { %386 = vperm.xlu1 %2279, %v2568_v9  }
  0x5f   :  { %318 = vperm.xlu0 %2288, %v58_v15  }
  0x62   :  { %2280 = vset.pattern.permute.xlu1 %v2487_v2 }
  0x63   :  { %208 = vperm.xlu1 %2280, %v2680_v28   ;;  %2292 = vset.pattern.permute.xlu0 %v2489_v11 }
  0x64   :  { %418 = vperm.xlu0 %2292, %v58_v15  }
  0x67   :  { %290 = vperm.xlu1 %2280, %v51_v26  }
  0x68   :  { %2294 = vset.pattern.permute.xlu0 %v2488_v3 }
  0x6b   :  { %2281 = vset.pattern.permute.xlu1 %v2488_v3 }
  0x6c   :  { %111 = vperm.xlu1 %2281, %v53_v29  }
  0x70   :  { %2282 = vset.pattern.permute.xlu1 %v2489_v11 }
  0x71   :  { %390 = vperm.xlu1 %2282, %v51_v26  }
  0x75   :  { %394 = vperm.xlu1 %2282, %v2573_v10  }
  0x79   :  { %2283 = vset.pattern.permute.xlu1 %v2487_v2 }
  0x7a   :  { %218 = vperm.xlu1 %2283, %v2695_v30  }
  0x7e   :  { %298 = vperm.xlu1 %2283, %v53_v29  }
  0x81   :  { %v2702_v32 = vpop.permute.xlu0 %61 }
  0x82   :  { %2284 = vset.pattern.permute.xlu1 %v2488_v3  ;;  %v2705_v33 = vpop.permute.xlu1 %163 }
  0x83   :  { %121 = vperm.xlu1 %2284, %v55_v31  }
  0x85   :  { %v67_v35 = vpop.permute.xlu0 %66 }
  0x86   :  { %v169_v36 = vpop.permute.xlu1 %168  ;;  %v146_v48 = vmul.f32 %v2726_v46, %v67_v35 }
  0x87   :  { %2285 = vset.pattern.permute.xlu1 %v2489_v11 }
  0x88   :  { %398 = vperm.xlu1 %2285, %v53_v29   ;;  %v242_v53 = vadd.f32 %v169_v36, %v146_v48 }
  0x89   :  { %v77_v39 = vpop.permute.xlu0 %76 }
  0x8a   :  { %v263_v38 = vpop.permute.xlu1 %262  ;;  %v148_v10 = vmul.f32 %v2726_v46, %v77_v39 }
  0x8b   :  { %v326_v51 = vmul.f32 %v2720_v45, %v263_v38 }
  0x8c   :  { %402 = vperm.xlu1 %2285, %v2581_v12  }
  0x8d   :  { %v87_v42 = vpop.permute.xlu0 %86  ;;  %v342_v58 = vadd.f32 %v326_v51, %v242_v53  ;;  %v145_v51 = vmul.f32 %v2726_v46, %v2702_v32 }
  0x8e   :  { %v150_v37 = vmul.f32 %v2726_v46, %v87_v42 }
  0x8f   :  { %v2717_v44 = vpop.permute.xlu1 %71  ;;  %v241_v42 = vadd.f32 %v2705_v33, %v145_v51 }
  0x90   :  { %2286 = vset.pattern.permute.xlu1 %v2487_v2 }
  0x91   :  { %228 = vperm.xlu1 %2286, %v2715_v43   ;;  %v2728_v47 = vpop.permute.xlu0 %96 }
  0x94   :  { %v2731_v50 = vpop.permute.xlu1 %358 }
  0x95   :  { %306 = vperm.xlu1 %2286, %v55_v31   ;;  %v2734_v52 = vpop.permute.xlu0 %106 }
  0x98   :  { %v363_v56 = vpop.permute.xlu1 %362 }
  0x99   :  { %v426_v57 = vmul.f32 %v2736_v54, %v363_v56  ;;  %2287 = vset.pattern.permute.xlu1 %v2488_v3  ;;  %v2743_v59 = vpop.permute.xlu0 %116 }
  0x9a   :  { %131 = vperm.xlu1 %2287, %v57_v55  }
  0x9b   :  { %v2745_v60 = vadd.f32 %v426_v57, %v342_v58  ;;  %v147_v57 = vmul.f32 %v2726_v46, %v2717_v44  ;;  %v152_v44 = vmul.f32 %v2726_v46, %v2728_v47 }
  0x9d   :  { %v179_v61 = vpop.permute.xlu1 %178  ;;  %459 = vadd.xlane.f32.xlu0 %v2745_v60  ;;  %v2749_v62 = vpop.permute.xlu0 %126 }
  0x9e   :  { %2289 = vset.pattern.permute.xlu1 %v2489_v11  ;;  %v244_v16 = vadd.f32 %v179_v61, %v148_v10 }
  0x9f   :  { %406 = vperm.xlu1 %2289, %v55_v31  }
  0xa1   :  { %v267_v63 = vpop.permute.xlu1 %266  ;;  %v2751_v0 = vpop.permute.xlu0 %136 }
  0xa2   :  { %v327_v32 = vmul.f32 %v2720_v45, %v267_v63 }
  0xa3   :  { %410 = vperm.xlu1 %2289, %v2592_v14  }
  0xa6   :  { %v82_v6 = vpop.permute.xlu1 %81  ;;  %v259_v7 = vpop.permute.xlu0 %258 }
  0xa7   :  { %2290 = vset.pattern.permute.xlu1 %v2487_v2 }
  0xa8   :  { %238 = vperm.xlu1 %2290, %v2757_v4  }
  0xaa   :  { %v174_v8 = vpop.permute.xlu0 %173 }
  0xab   :  { %v367_v9 = vpop.permute.xlu1 %366  ;;  %v243_v58 = vadd.f32 %v174_v8, %v147_v57 }
  0xac   :  { %314 = vperm.xlu1 %2290, %v57_v55   ;;  %v427_v33 = vmul.f32 %v2736_v54, %v367_v9 }
  0xae   :  { %v271_v12 = vpop.permute.xlu0 %270 }
  0xaf   :  { %v371_v15 = vpop.permute.xlu1 %370  ;;  %v328_v14 = vmul.f32 %v2720_v45, %v271_v12  ;;  %v425_v12 = vmul.f32 %v2736_v54, %v2731_v50 }
  0xb0   :  { %2291 = vset.pattern.permute.xlu1 %v2489_v11  ;;  %v428_v21 = vmul.f32 %v2736_v54, %v371_v15 }
  0xb1   :  { %414 = vperm.xlu1 %2291, %v57_v55   ;;  %v344_v26 = vadd.f32 %v328_v14, %v244_v16  ;;  %v325_v55 = vmul.f32 %v2720_v45, %v259_v7  ;;  %v343_v7 = vadd.f32 %v327_v32, %v243_v58 }
  0xb2   :  { %v184_v34 = vpop.permute.xlu0 %183 }
  0xb3   :  { %v2765_v2 = vadd.f32 %v428_v21, %v344_v26  ;;  %v341_v10 = vadd.f32 %v325_v55, %v241_v42  ;;  %v149_v21 = vmul.f32 %v2726_v46, %v82_v6 }
  0xb4   :  { %v189_v29 = vpop.permute.xlu1 %188 }
  0xb5   :  { %2293 = vset.pattern.permute.xlu1 %v2488_v3  ;;  %463 = vadd.xlane.f32.xlu0 %v2765_v2  ;;  %v246_v40 = vadd.f32 %v189_v29, %v150_v37  ;;  %v2784_v16 = vadd.f32 %v425_v12, %v341_v10  ;;  %v245_v8 = vadd.f32 %v184_v34, %v149_v21 }
  0xb6   :  { %v279_v36 = vpop.permute.xlu0 %278  ;;  %v154_v10 = vmul.f32 %v2726_v46, %v2734_v52 }
  0xb7   :  { %v330_v39 = vmul.f32 %v2720_v45, %v279_v36  ;;  %v2794_v36 = vadd.f32 %v427_v33, %v343_v7 }
  0xb8   :  { %v275_v31 = vpop.permute.xlu1 %274 }
  0xb9   :  { %v346_v49 = vadd.f32 %v330_v39, %v246_v40  ;;  %v329_v26 = vmul.f32 %v2720_v45, %v275_v31 }
  0xba   :  { %v194_v15 = vpop.permute.xlu0 %193 }
  0xbb   :  { %v345_v9 = vadd.f32 %v329_v26, %v245_v8 }
  0xbd   :  { %v92_v35 = vpop.permute.xlu1 %91 }
  0xbe   :  { %v151_v50 = vmul.f32 %v2726_v46, %v92_v35  ;;  %v287_v29 = vpop.permute.xlu0 %286 }
  0xbf   :  { %v332_v31 = vmul.f32 %v2720_v45, %v287_v29 }
  0xc0   :  { %v247_v40 = vadd.f32 %v194_v15, %v151_v50 }
  0xc2   :  { %v375_v38 = vpop.permute.xlu1 %374  ;;  %v204_v42 = vpop.permute.xlu0 %203 }
  0xc3   :  { %v429_v63 = vmul.f32 %v2736_v54, %v375_v38 }
  0xc5   :  { %v2800_v34 = vadd.f32 %v429_v63, %v345_v9 }
  0xc6   :  { %v379_v41 = vpop.permute.xlu1 %378  ;;  %v295_v32 = vpop.permute.xlu0 %294 }
  0xc7   :  { %v430_v48 = vmul.f32 %v2736_v54, %v379_v41  ;;  %v334_v7 = vmul.f32 %v2720_v45, %v295_v32 }
  0xc9   :  { %v2774_v53 = vadd.f32 %v430_v48, %v346_v49 }
  0xcb   :  { %v199_v56 = vpop.permute.xlu1 %198  ;;  %467 = vadd.xlane.f32.xlu0 %v2774_v53 }
  0xcc   :  { %v248_v39 = vadd.f32 %v199_v56, %v152_v44 }
  0xce   :  { %v348_v48 = vadd.f32 %v332_v31, %v248_v39  ;;  %v156_v39 = vmul.f32 %v2726_v46, %v2743_v59 }
  0xcf   :  { %v283_v61 = vpop.permute.xlu1 %282 }
  0xd0   :  { %v331_v37 = vmul.f32 %v2720_v45, %v283_v61 }
  0xd2   :  { %v347_v38 = vadd.f32 %v331_v37, %v247_v40  ;;  %v214_v37 = vpop.permute.xlu0 %213 }
  0xd4   :  { %v102_v14 = vpop.permute.xlu1 %101 }
  0xd5   :  { %457 = vadd.xlane.f32.xlu1 %v2784_v16  ;;  %v153_v57 = vmul.f32 %v2726_v46, %v102_v14 }
  0xd7   :  { %v249_v12 = vadd.f32 %v204_v42, %v153_v57 }
  0xd9   :  { %v383_v6 = vpop.permute.xlu1 %382  ;;  %461 = vadd.xlane.f32.xlu1 %v2794_v36 }
  0xda   :  { %v431_v47 = vmul.f32 %v2736_v54, %v383_v6 }
  0xdc   :  { %v2804_v49 = vadd.f32 %v431_v47, %v347_v38 }
  0xdd   :  { %v387_v35 = vpop.permute.xlu1 %386  ;;  %465 = vadd.xlane.f32.xlu1 %v2800_v34 }
  0xde   :  { %v432_v41 = vmul.f32 %v2736_v54, %v387_v35  ;;  %v303_v35 = vpop.permute.xlu0 %302 }
  0xe0   :  { %v2806_v51 = vadd.f32 %v432_v41, %v348_v48 }
  0xe1   :  { %469 = vadd.xlane.f32.xlu1 %v2804_v49 }
  0xe2   :  { %v209_v55 = vpop.permute.xlu1 %208  ;;  %471 = vadd.xlane.f32.xlu0 %v2806_v51 }
  0xe3   :  { %v250_v21 = vadd.f32 %v209_v55, %v154_v10  ;;  %v336_v55 = vmul.f32 %v2720_v45, %v303_v35 }
  0xe5   :  { %v350_v50 = vadd.f32 %v334_v7, %v250_v21 }
  0xe6   :  { %v291_v56 = vpop.permute.xlu1 %290 }
  0xe7   :  { %v333_v61 = vmul.f32 %v2720_v45, %v291_v56 }
  0xe9   :  { %v349_v26 = vadd.f32 %v333_v61, %v249_v12  ;;  %v224_v61 = vpop.permute.xlu0 %223 }
  0xeb   :  { %v112_v58 = vpop.permute.xlu1 %111 }
  0xec   :  { %v155_v6 = vmul.f32 %v2726_v46, %v112_v58 }
  0xed   :  { %v311_v12 = vpop.permute.xlu0 %310 }
  0xee   :  { %v251_v40 = vadd.f32 %v214_v37, %v155_v6  ;;  %v338_v6 = vmul.f32 %v2720_v45, %v311_v12 }
  0xf0   :  { %v391_v15 = vpop.permute.xlu1 %390 }
  0xf1   :  { %v433_v33 = vmul.f32 %v2736_v54, %v391_v15  ;;  %v234_v21 = vpop.permute.xlu0 %233 }
  0xf3   :  { %v2816_v44 = vadd.f32 %v433_v33, %v349_v26  ;;  %v158_v26 = vmul.f32 %v2726_v46, %v2749_v62  ;;  %v160_v62 = vmul.f32 %v2726_v46, %v2751_v0 }
  0xf4   :  { %v395_v8 = vpop.permute.xlu1 %394 }
  0xf5   :  { %v434_v14 = vmul.f32 %v2736_v54, %v395_v8  ;;  %473 = vadd.xlane.f32.xlu1 %v2816_v44  ;;  %v319_v37 = vpop.permute.xlu0 %318 }
  0xf7   :  { %v2820_v63 = vadd.f32 %v434_v14, %v350_v50 }
  0xf9   :  { %v219_v52 = vpop.permute.xlu1 %218  ;;  %475 = vadd.xlane.f32.xlu0 %v2820_v63 }
  0xfa   :  { %v252_v38 = vadd.f32 %v219_v52, %v156_v39 }
  0xfc   :  { %v352_v58 = vadd.f32 %v336_v55, %v252_v38 }
  0xfd   :  { %v299_v29 = vpop.permute.xlu1 %298 }
  0xfe   :  { %v335_v31 = vmul.f32 %v2720_v45, %v299_v29 }
 0x100   :  { %v351_v48 = vadd.f32 %v335_v31, %v251_v40 }
 0x102   :  { %v122_v9 = vpop.permute.xlu1 %121 }
 0x103   :  { %v157_v15 = vmul.f32 %v2726_v46, %v122_v9 }
 0x105   :  { %v253_v8 = vadd.f32 %v224_v61, %v157_v15 }
 0x107   :  { %v399_v47 = vpop.permute.xlu1 %398 }
 0x108   :  { %v435_v41 = vmul.f32 %v2736_v54, %v399_v47  ;;  %v419_v47 = vpop.permute.xlu0 %418 }
 0x10a   :  { %v2829_v56 = vadd.f32 %v435_v41, %v351_v48  ;;  %v340_v41 = vmul.f32 %v2720_v45, %v319_v37  ;;  %v440_v48 = vmul.f32 %v2736_v54, %v419_v47 }
 0x10b   :  { %v403_v42 = vpop.permute.xlu1 %402 }
 0x10c   :  { %v436_v57 = vmul.f32 %v2736_v54, %v403_v42  ;;  %477 = vadd.xlane.f32.xlu1 %v2829_v56 }
 0x10e   :  { %v2833_v10 = vadd.f32 %v436_v57, %v352_v58 }
 0x110   :  { %v229_v59 = vpop.permute.xlu1 %228  ;;  %479 = vadd.xlane.f32.xlu0 %v2833_v10 }
 0x111   :  { %v254_v50 = vadd.f32 %v229_v59, %v158_v26 }
 0x113   :  { %v354_v40 = vadd.f32 %v338_v6, %v254_v50 }
 0x114   :  { %v307_v32 = vpop.permute.xlu1 %306 }
 0x115   :  { %v337_v33 = vmul.f32 %v2720_v45, %v307_v32 }
 0x117   :  { %v353_v29 = vadd.f32 %v337_v33, %v253_v8 }
 0x119   :  { %v132_v7 = vpop.permute.xlu1 %131 }
 0x11a   :  { %v159_v58 = vmul.f32 %v2726_v46, %v132_v7 }
 0x11c   :  { %v255_v15 = vadd.f32 %v234_v21, %v159_v58 }
 0x11e   :  { %v407_v14 = vpop.permute.xlu1 %406 }
 0x11f   :  { %v437_v52 = vmul.f32 %v2736_v54, %v407_v14 }
 0x121   :  { %v2842_v31 = vadd.f32 %v437_v52, %v353_v29 }
 0x122   :  { %v411_v39 = vpop.permute.xlu1 %410 }
 0x123   :  { %v438_v9 = vmul.f32 %v2736_v54, %v411_v39  ;;  %481 = vadd.xlane.f32.xlu1 %v2842_v31 }
 0x125   :  { %v2846_v35 = vadd.f32 %v438_v9, %v354_v40 }
 0x127   :  { %v239_v38 = vpop.permute.xlu1 %238  ;;  %483 = vadd.xlane.f32.xlu0 %v2846_v35 }
 0x128   :  { %v256_v55 = vadd.f32 %v239_v38, %v160_v62 }
 0x12a   :  { %v460_v42 = vpop.xlane.xlu0 %459  ;;  %v356_v57 = vadd.f32 %v340_v41, %v256_v55 }
 0x12b   :  { %v490_v61 = vmul.f32 0.0078125, %v460_v42  ;;  %v315_v59 = vpop.permute.xlu1 %314 }
 0x12c   :  { %v2854_v12 = vadd.f32 %v440_v48, %v356_v57  ;;  %v339_v32 = vmul.f32 %v2720_v45, %v315_v59 }
 0x12d   :  { %v2858_v0 = vsub.f32 %v2745_v60, %v490_v61 }
 0x12e   :  { %487 = vadd.xlane.f32.xlu0 %v2854_v12  ;;  %v355_v14 = vadd.f32 %v339_v32, %v255_v15 }
 0x12f   :  { %v522_v33 = vmul.f32 %v2858_v0, %v2858_v0 }
 0x130   :  { %v415_v26 = vpop.permute.xlu1 %414 }
 0x131   :  { %v439_v8 = vmul.f32 %v2736_v54, %v415_v26 }
 0x132   :  { %539 = vadd.xlane.f32.xlu0 %v522_v33 }
 0x133   :  { %v2864_v46 = vadd.f32 %v439_v8, %v355_v14 }
 0x135   :  { %485 = vadd.xlane.f32.xlu1 %v2864_v46 }
 0x142   :  { %v464_v7 = vpop.xlane.xlu0 %463 }
 0x143   :  { %v492_v45 = vmul.f32 0.0078125, %v464_v7 }
 0x145   :  { %v2868_v60 = vsub.f32 %v2765_v2, %v492_v45 }
 0x147   :  { %v524_v21 = vmul.f32 %v2868_v60, %v2868_v60 }
 0x149   :  { %543 = vadd.xlane.f32.xlu0 %v524_v21 }
 0x158   :  { %v468_v50 = vpop.xlane.xlu0 %467 }
 0x159   :  { %v494_v52 = vmul.f32 0.0078125, %v468_v50 }
 0x15b   :  { %v2873_v29 = vsub.f32 %v2774_v53, %v494_v52 }
 0x15d   :  { %v526_v54 = vmul.f32 %v2873_v29, %v2873_v29 }
 0x15f   :  { %547 = vadd.xlane.f32.xlu0 %v526_v54 }
 0x162   :  { %v458_v37 = vpop.xlane.xlu1 %457 }
 0x163   :  { %v489_v6 = vmul.f32 0.0078125, %v458_v37 }
 0x165   :  { %v2878_v39 = vsub.f32 %v2784_v16, %v489_v6 }
 0x166   :  { %v462_v2 = vpop.xlane.xlu1 %461 }
 0x167   :  { %v491_v9 = vmul.f32 0.0078125, %v462_v2  ;;  %v521_v40 = vmul.f32 %v2878_v39, %v2878_v39 }
 0x169   :  { %537 = vadd.xlane.f32.xlu1 %v521_v40  ;;  %v2883_v47 = vsub.f32 %v2794_v36, %v491_v9 }
 0x16a   :  { %v466_v53 = vpop.xlane.xlu1 %465 }
 0x16b   :  { %v493_v62 = vmul.f32 0.0078125, %v466_v53  ;;  %v523_v38 = vmul.f32 %v2883_v47, %v2883_v47 }
 0x16d   :  { %v2888_v41 = vsub.f32 %v2800_v34, %v493_v62  ;;  %541 = vadd.xlane.f32.xlu1 %v523_v38 }
 0x16e   :  { %v470_v16 = vpop.xlane.xlu1 %469 }
 0x16f   :  { %v495_v48 = vmul.f32 0.0078125, %v470_v16  ;;  %v472_v55 = vpop.xlane.xlu0 %471  ;;  %v525_v42 = vmul.f32 %v2888_v41, %v2888_v41 }
 0x170   :  { %v496_v57 = vmul.f32 0.0078125, %v472_v55 }
 0x171   :  { %v2893_v58 = vsub.f32 %v2804_v49, %v495_v48  ;;  %545 = vadd.xlane.f32.xlu1 %v525_v42 }
 0x172   :  { %v2896_v36 = vsub.f32 %v2806_v51, %v496_v57 }
 0x173   :  { %v527_v61 = vmul.f32 %v2893_v58, %v2893_v58 }
 0x174   :  { %v528_v34 = vmul.f32 %v2896_v36, %v2896_v36 }
 0x175   :  { %549 = vadd.xlane.f32.xlu1 %v527_v61 }
 0x176   :  { %551 = vadd.xlane.f32.xlu0 %v528_v34 }
 0x182   :  { %v474_v59 = vpop.xlane.xlu1 %473 }
 0x183   :  { %v497_v32 = vmul.f32 0.0078125, %v474_v59 }
 0x185   :  { %v2903_v15 = vsub.f32 %v2816_v44, %v497_v32 }
 0x186   :  { %v476_v33 = vpop.xlane.xlu0 %475 }
 0x187   :  { %v498_v49 = vmul.f32 0.0078125, %v476_v33  ;;  %v529_v26 = vmul.f32 %v2903_v15, %v2903_v15 }
 0x189   :  { %553 = vadd.xlane.f32.xlu1 %v529_v26  ;;  %v2908_v51 = vsub.f32 %v2820_v63, %v498_v49 }
 0x18b   :  { %v530_v8 = vmul.f32 %v2908_v51, %v2908_v51 }
 0x18d   :  { %555 = vadd.xlane.f32.xlu0 %v530_v8 }
 0x199   :  { %v478_v14 = vpop.xlane.xlu1 %477 }
 0x19a   :  { %v499_v7 = vmul.f32 0.0078125, %v478_v14 }
 0x19c   :  { %v2913_v45 = vsub.f32 %v2829_v56, %v499_v7 }
 0x19d   :  { %v480_v44 = vpop.xlane.xlu0 %479 }
 0x19e   :  { %v500_v21 = vmul.f32 0.0078125, %v480_v44  ;;  %v531_v50 = vmul.f32 %v2913_v45, %v2913_v45 }
 0x1a0   :  { %557 = vadd.xlane.f32.xlu1 %v531_v50  ;;  %v2918_v52 = vsub.f32 %v2833_v10, %v500_v21 }
 0x1a2   :  { %v532_v63 = vmul.f32 %v2918_v52, %v2918_v52 }
 0x1a4   :  { %559 = vadd.xlane.f32.xlu0 %v532_v63 }
 0x1b0   :  { %v482_v54 = vpop.xlane.xlu1 %481 }
 0x1b1   :  { %v501_v37 = vmul.f32 0.0078125, %v482_v54 }
 0x1b3   :  { %v2923_v6 = vsub.f32 %v2842_v31, %v501_v37 }
 0x1b4   :  { %v484_v56 = vpop.xlane.xlu0 %483 }
 0x1b5   :  { %v502_v2 = vmul.f32 0.0078125, %v484_v56  ;;  %v533_v9 = vmul.f32 %v2923_v6, %v2923_v6 }
 0x1b7   :  { %561 = vadd.xlane.f32.xlu1 %v533_v9  ;;  %v2928_v40 = vsub.f32 %v2846_v35, %v502_v2 }
 0x1b9   :  { %v534_v10 = vmul.f32 %v2928_v40, %v2928_v40 }
 0x1bb   :  { %563 = vadd.xlane.f32.xlu0 %v534_v10  ;;  %v488_v53 = vpop.xlane.xlu0 %487 }
 0x1bc   :  { %v504_v62 = vmul.f32 0.0078125, %v488_v53 }
 0x1be   :  { %v2933_v38 = vsub.f32 %v2854_v12, %v504_v62 }
 0x1bf   :  { %v540_v42 = vpop.xlane.xlu0 %539 }
 0x1c0   :  { %v536_v31 = vmul.f32 %v2933_v38, %v2933_v38  ;;  %v570_v57 = vmul.f32 0.0078125, %v540_v42 }
 0x1c2   :  { %567 = vadd.xlane.f32.xlu0 %v536_v31  ;;  %v486_v16 = vpop.xlane.xlu1 %485  ;;  %v586_v61 = vadd.f32 1e-05, %v570_v57 }
 0x1c3   :  { %v503_v48 = vmul.f32 0.0078125, %v486_v16 }
 0x1c4   :  { %2338 = vrsqrt.f32 %v586_v61 }
 0x1c5   :  { %v2938_v55 = vsub.f32 %v2864_v46, %v503_v48 }
 0x1c7   :  { %v535_v35 = vmul.f32 %v2938_v55, %v2938_v55 }
 0x1c9   :  { %565 = vadd.xlane.f32.xlu1 %v535_v35 }
 0x1ce   :  { %v2339_v12 = vpop.eup %2338 }
 0x1cf   :  { %v618_v46 = vmul.f32 %v2339_v12, %v2552_v5 }
 0x1d6   :  { %v544_v34 = vpop.xlane.xlu0 %543 }
 0x1d7   :  { %v572_v59 = vmul.f32 0.0078125, %v544_v34 }
 0x1d8   :  { %738 = vperm.xlu0 %2294, %v2608_v17  }
 0x1d9   :  { %v588_v26 = vadd.f32 1e-05, %v572_v59 }
 0x1da   :  { %730 = vperm.xlu1 %2293, %v2541_v1  }
 0x1dc   :  { %754 = vperm.xlu0 %2294, %v2628_v20  }
 0x1de   :  { %734 = vperm.xlu1 %2293, %v2552_v5  }
 0x1e0   :  { %770 = vperm.xlu0 %2294, %v2652_v24  }
 0x1e2   :  { %742 = vperm.xlu1 %2293, %v2587_v13  }
 0x1e4   :  { %2296 = vset.pattern.permute.xlu0 %v2489_v11 }
 0x1e5   :  { %640 = vperm.xlu0 %2296, %v618_v46  }
 0x1e6   :  { %746 = vperm.xlu1 %2293, %v2615_v18  }
 0x1ea   :  { %750 = vperm.xlu1 %2293, %v2620_v19  }
 0x1ec   :  { %v548_v32 = vpop.xlane.xlu0 %547 }
 0x1ed   :  { %v574_v5 = vmul.f32 0.0078125, %v548_v32 }
 0x1ee   :  { %758 = vperm.xlu1 %2293, %v2647_v23  }
 0x1ef   :  { %v590_v44 = vadd.f32 1e-05, %v574_v5 }
 0x1f2   :  { %762 = vperm.xlu1 %2293, %v2639_v22  }
 0x1f6   :  { %v538_v33 = vpop.xlane.xlu1 %537  ;;  %766 = vperm.xlu1 %2293, %v2680_v28  }
 0x1f7   :  { %v569_v49 = vmul.f32 0.0078125, %v538_v33 }
 0x1f9   :  { %v585_v8 = vadd.f32 1e-05, %v569_v49 }
 0x1fa   :  { %v542_v14 = vpop.xlane.xlu1 %541  ;;  %774 = vperm.xlu1 %2293, %v2695_v30  }
 0x1fb   :  { %2340 = vrsqrt.f32 %v585_v8  ;;  %v571_v7 = vmul.f32 0.0078125, %v542_v14 }
 0x1fc   :  { %2342 = vrsqrt.f32 %v588_v26 }
 0x1fd   :  { %v587_v21 = vadd.f32 1e-05, %v571_v7 }
 0x1fe   :  { %v546_v50 = vpop.xlane.xlu1 %545  ;;  %778 = vperm.xlu1 %2293, %v2661_v25  }
 0x1ff   :  { %2344 = vrsqrt.f32 %v587_v21  ;;  %v573_v63 = vmul.f32 0.0078125, %v546_v50 }
 0x200   :  { %2346 = vrsqrt.f32 %v590_v44 }
 0x201   :  { %v589_v54 = vadd.f32 1e-05, %v573_v63 }
 0x202   :  { %v550_v37 = vpop.xlane.xlu1 %549  ;;  %782 = vperm.xlu1 %2293, %v2715_v43  }
 0x203   :  { %2348 = vrsqrt.f32 %v589_v54  ;;  %v575_v56 = vmul.f32 0.0078125, %v550_v37  ;;  %v552_v2 = vpop.xlane.xlu0 %551 }
 0x204   :  { %v576_v9 = vmul.f32 0.0078125, %v552_v2 }
 0x205   :  { %v2341_v10 = vpop.eup %2340  ;;  %v591_v53 = vadd.f32 1e-05, %v575_v56 }
 0x206   :  { %v592_v62 = vadd.f32 1e-05, %v576_v9  ;;  %2295 = vset.pattern.permute.xlu1 %v2489_v11  ;;  %v617_v31 = vmul.f32 %v2341_v10, %v2541_v1  ;;  %v2343_v16 = vpop.eup %2342 }
 0x207   :  { %2350 = vrsqrt.f32 %v591_v53  ;;  %v620_v35 = vmul.f32 %v2343_v16, %v2587_v13 }
 0x208   :  { %2352 = vrsqrt.f32 %v592_v62  ;;  %635 = vperm.xlu1 %2295, %v617_v31  }
 0x209   :  { %v2345_v48 = vpop.eup %2344 }
 0x20a   :  { %v619_v42 = vmul.f32 %v2345_v48, %v2608_v17  ;;  %v2347_v57 = vpop.eup %2346 }
 0x20b   :  { %v622_v12 = vmul.f32 %v2347_v57, %v2620_v19 }
 0x20c   :  { %650 = vperm.xlu1 %2295, %v620_v35   ;;  %645 = vperm.xlu0 %2296, %v619_v42  }
 0x20d   :  { %v2349_v61 = vpop.eup %2348 }
 0x20e   :  { %v621_v46 = vmul.f32 %v2349_v61, %v2615_v18 }
 0x210   :  { %660 = vperm.xlu0 %2296, %v622_v12   ;;  %655 = vperm.xlu1 %2295, %v621_v46  }
 0x211   :  { %v2351_v1 = vpop.eup %2350 }
 0x212   :  { %v2353_v11 = vpop.eup %2352  ;;  %v623_v34 = vmul.f32 %v2351_v1, %v2628_v20 }
 0x213   :  { %v624_v59 = vmul.f32 %v2353_v11, %v2647_v23 }
 0x214   :  { %665 = vperm.xlu0 %2296, %v623_v34  }
 0x215   :  { %670 = vperm.xlu1 %2295, %v624_v59  }
 0x216   :  { %v554_v13 = vpop.xlane.xlu1 %553 }
 0x217   :  { %v577_v17 = vmul.f32 0.0078125, %v554_v13 }
 0x219   :  { %v593_v32 = vadd.f32 1e-05, %v577_v17 }
 0x21a   :  { %v556_v33 = vpop.xlane.xlu0 %555 }
 0x21b   :  { %2354 = vrsqrt.f32 %v593_v32  ;;  %v578_v49 = vmul.f32 0.0078125, %v556_v33 }
 0x21d   :  { %v594_v26 = vadd.f32 1e-05, %v578_v49 }
 0x21f   :  { %2356 = vrsqrt.f32 %v594_v26 }
 0x225   :  { %v2355_v19 = vpop.eup %2354 }
 0x226   :  { %v625_v18 = vmul.f32 %v2355_v19, %v2639_v22  ;;  %v2322_v19 = vld [vmem:[%s3612_s3] sm:$0xff]  }
 0x227   :  { %2186 = vmatprep.mubr.bf16.mxu0 %v2322_v19  ;;  %v3046_v19 = vld [vmem:[%s3614_s5 + $0x40] sm:$0xff] }
 0x228   :  { %675 = vperm.xlu1 %2295, %v625_v18  }
 0x229   :  { %v2357_v5 = vpop.eup %2356 }
 0x22a   :  { %v626_v8 = vmul.f32 %v2357_v5, %v2680_v28 }
 0x22c   :  { %680 = vperm.xlu0 %2296, %v626_v8  }
 0x22d   :  { %v558_v20 = vpop.xlane.xlu1 %557 }
 0x22e   :  { %v579_v23 = vmul.f32 0.0078125, %v558_v20 }
 0x230   :  { %v595_v14 = vadd.f32 1e-05, %v579_v23 }
 0x231   :  { %v560_v7 = vpop.xlane.xlu0 %559 }
 0x232   :  { %2358 = vrsqrt.f32 %v595_v14  ;;  %v580_v44 = vmul.f32 0.0078125, %v560_v7 }
 0x234   :  { %v596_v21 = vadd.f32 1e-05, %v580_v44 }
 0x236   :  { %2360 = vrsqrt.f32 %v596_v21 }
 0x23c   :  { %v2359_v50 = vpop.eup %2358 }
 0x23d   :  { %v627_v63 = vmul.f32 %v2359_v50, %v2652_v24 }
 0x23f   :  { %685 = vperm.xlu0 %2296, %v627_v63  }
 0x240   :  { %v2361_v54 = vpop.eup %2360 }
 0x241   :  { %v628_v22 = vmul.f32 %v2361_v54, %v2695_v30 }
 0x243   :  { %690 = vperm.xlu1 %2295, %v628_v22  }
 0x244   :  { %v562_v37 = vpop.xlane.xlu1 %561 }
 0x245   :  { %v581_v56 = vmul.f32 0.0078125, %v562_v37 }
 0x247   :  { %v597_v2 = vadd.f32 1e-05, %v581_v56 }
 0x248   :  { %v564_v9 = vpop.xlane.xlu0 %563 }
 0x249   :  { %2362 = vrsqrt.f32 %v597_v2  ;;  %v582_v10 = vmul.f32 0.0078125, %v564_v9 }
 0x24b   :  { %v598_v53 = vadd.f32 1e-05, %v582_v10 }
 0x24d   :  { %2364 = vrsqrt.f32 %v598_v53 }
 0x24f   :  { %v568_v62 = vpop.xlane.xlu0 %567 }
 0x250   :  { %v584_v31 = vmul.f32 0.0078125, %v568_v62 }
 0x252   :  { %v600_v16 = vadd.f32 1e-05, %v584_v31 }
 0x253   :  { %v2363_v48 = vpop.eup %2362 }
 0x254   :  { %2366 = vrsqrt.f32 %v600_v16  ;;  %v629_v24 = vmul.f32 %v2363_v48, %v2661_v25 }
 0x256   :  { %695 = vperm.xlu1 %2295, %v629_v24   ;;  %v566_v35 = vpop.xlane.xlu1 %565  ;;  %v2490_v24 = vmov 3  }
 0x257   :  { %v2365_v42 = vpop.eup %2364  ;;  %v583_v57 = vmul.f32 0.0078125, %v566_v35  ;;  %v739_v49 = vpop.permute.xlu0 %738 }
 0x258   :  { %v630_v61 = vmul.f32 %v2365_v42, %v2715_v43 }
 0x259   :  { %v599_v12 = vadd.f32 1e-05, %v583_v57 }
 0x25a   :  { %700 = vperm.xlu0 %2296, %v630_v61   ;;  %v731_v46 = vpop.permute.xlu1 %730 }
 0x25b   :  { %2368 = vrsqrt.f32 %v599_v12  ;;  %v755_v18 = vpop.permute.xlu0 %754 }
 0x25e   :  { %v2367_v1 = vpop.eup %2366  ;;  %v735_v11 = vpop.permute.xlu1 %734 }
 0x25f   :  { %v632_v34 = vmul.f32 %v2367_v1, %v2757_v4  ;;  %v2987_v20 = vpop.permute.xlu0 %770 }
 0x261   :  { %710 = vperm.xlu1 %2295, %v632_v34  }
 0x262   :  { %v743_v59 = vpop.permute.xlu1 %742 }
 0x265   :  { %v2369_v13 = vpop.eup %2368  ;;  %2298 = vset.pattern.permute.xlu1 %v2488_v3 }
 0x266   :  { %790 = vperm.xlu1 %2298, %v2757_v4   ;;  %v747_v25 = vpop.permute.xlu1 %746  ;;  %v631_v17 = vmul.f32 %v2369_v13, %v2673_v27 }
 0x268   :  { %705 = vperm.xlu0 %2296, %v631_v17   ;;  %v3028_v17 = vld [vmem:[%s3614_s5 + $0x18] sm:$0xff] }
 0x26a   :  { %v751_v32 = vpop.permute.xlu1 %750  ;;  %2299 = vset.pattern.permute.xlu1 %v2490_v24 }
 0x26c   :  { %2297 = vset.pattern.permute.xlu0 %v2488_v3  ;;  %v641_v3 = vpop.permute.xlu0 %640 }
 0x26d   :  { %786 = vperm.xlu0 %2297, %v2673_v27   ;;  %v714_v14 = vmul.f32 %v641_v3, %v2858_v0  ;;  %v3058_v3 = vld [vmem:[%s3614_s5 + $0x50] sm:$0xff] }
 0x26e   :  { %v759_v33 = vpop.permute.xlu1 %758 }
 0x26f   :  { %v794_v44 = vadd.f32 %v735_v11, %v714_v14  ;;  %v3016_v11 = vld [vmem:[%s3614_s5 + $0x10] sm:$0xff] }
 0x271   :  { %v810_v2 = vmax.f32 %v794_v44, 0.0  ;;  %2300 = vset.pattern.permute.xlu0 %v2490_v24 }
 0x272   :  { %v2978_v26 = vpop.permute.xlu1 %762 }
 0x276   :  { %v2983_v5 = vpop.permute.xlu1 %766 }
 0x27a   :  { %v2985_v8 = vpop.permute.xlu1 %774 }
 0x27e   :  { %v2989_v23 = vpop.permute.xlu1 %778 }
 0x282   :  { %v2991_v27 = vpop.permute.xlu1 %782 }
 0x287   :  { %v636_v7 = vpop.permute.xlu1 %635 }
 0x288   :  { %v713_v21 = vmul.f32 %v636_v7, %v2878_v39  ;;  %v3065_v7 = vld [vmem:[%s3614_s5 + $0x60] sm:$0xff] }
 0x28a   :  { %v793_v50 = vadd.f32 %v731_v46, %v713_v21 }
 0x28b   :  { %v646_v63 = vpop.permute.xlu0 %645  ;;  %v651_v54 = vpop.permute.xlu1 %650 }
 0x28c   :  { %v715_v22 = vmul.f32 %v646_v63, %v2883_v47  ;;  %v716_v37 = vmul.f32 %v651_v54, %v2868_v60  ;;  %v809_v56 = vmax.f32 %v793_v50, 0.0  ;;  %v3002_v60 = vld [vmem:[%s3614_s5] sm:$0xff]  ;;  %v3073_v50 = vld [vmem:[%s3614_s5 + $0x70] sm:$0xff] }
 0x28d   :  { %850 = vperm.xlu1 %2299, %v3002_v60  }
 0x28e   :  { %v795_v9 = vadd.f32 %v739_v49, %v715_v22  ;;  %v796_v10 = vadd.f32 %v743_v59, %v716_v37  ;;  %v825_v53 = vpack.c.bf16 %v810_v2, %v809_v56  ;;  %v3040_v49 = vld [vmem:[%s3614_s5 + $0x28] sm:$0xff] }
 0x28f   :  { %v661_v62 = vpop.permute.xlu0 %660  ;;  %v656_v31 = vpop.permute.xlu1 %655 }
 0x290   :  { %v811_v16 = vmax.f32 %v795_v9, 0.0  ;;  %v812_v0 = vmax.f32 %v796_v10, 0.0  ;;  %v718_v48 = vmul.f32 %v661_v62, %v2873_v29  ;;  %v717_v39 = vmul.f32 %v656_v31, %v2888_v41  ;;  %2170 = vmatprep.subr.bf16.mxu0 %v825_v53  ;;  %v3008_v29 = vld [vmem:[%s3614_s5 + $0x8] sm:$0xff] }
 0x291   :  { %2171 = vmatpush3.bf16.msra.mxu0 %v825_v53  ;;  %854 = vperm.xlu0 %2300, %v3008_v29  }
 0x292   :  { %v798_v47 = vadd.f32 %v751_v32, %v718_v48  ;;  %v797_v35 = vadd.f32 %v747_v25, %v717_v39  ;;  %v826_v42 = vpack.c.bf16 %v812_v0, %v811_v16  ;;  %858 = vperm.xlu1 %2299, %v3016_v11   ;;  %v3022_v25 = vld [vmem:[%s3614_s5 + $0x20] sm:$0xff] }
 0x293   :  { %v666_v57 = vpop.permute.xlu0 %665 }
 0x294   :  { %v814_v41 = vmax.f32 %v798_v47, 0.0  ;;  %v813_v61 = vmax.f32 %v797_v35, 0.0  ;;  %v719_v12 = vmul.f32 %v666_v57, %v2893_v58  ;;  %2172 = vmatprep.subr.bf16.mxu0 %v826_v42  ;;  %v671_v46 = vpop.permute.xlu1 %670 }
 0x295   :  { %v720_v1 = vmul.f32 %v671_v46, %v2896_v36  ;;  %2173 = vmatpush3.bf16.msra.mxu0 %v826_v42  ;;  %866 = vperm.xlu0 %2300, %v3022_v25   ;;  %v2329_v46 = vld [vmem:[%s3612_s3 + $0x38] sm:$0xff]  }
 0x296   :  { %v799_v34 = vadd.f32 %v755_v18, %v719_v12  ;;  %v827_v59 = vpack.c.bf16 %v814_v41, %v813_v61  ;;  %862 = vperm.xlu1 %2299, %v3028_v17   ;;  %v3052_v18 = vld [vmem:[%s3614_s5 + $0x38] sm:$0xff]  ;;  %v2324_v41 = vld [vmem:[%s3612_s3 + $0x10] sm:$0xff]   ;;  %v2327_v61 = vld [vmem:[%s3612_s3 + $0x28] sm:$0xff]  }
 0x297   :  { %v800_v13 = vadd.f32 %v759_v33, %v720_v1  ;;  %v3034_v33 = vld [vmem:[%s3614_s5 + $0x30] sm:$0xff] }
 0x298   :  { %v815_v58 = vmax.f32 %v799_v34, 0.0  ;;  %2174 = vmatprep.subr.bf16.mxu0 %v827_v59  ;;  %v2328_v12 = vld [vmem:[%s3612_s3 + $0x30] sm:$0xff]  }
 0x299   :  { %v816_v36 = vmax.f32 %v800_v13, 0.0  ;;  %2175 = vmatpush3.bf16.msra.mxu0 %v827_v59  ;;  %874 = vperm.xlu0 %2300, %v3034_v33  }
 0x29a   :  { %870 = vperm.xlu1 %2299, %v3040_v49  }
 0x29b   :  { %v828_v32 = vpack.c.bf16 %v816_v36, %v815_v58 }
 0x29d   :  { %2176 = vmatprep.subr.bf16.mxu0 %v828_v32  ;;  %882 = vperm.xlu0 %2300, %v3046_v19  }
 0x29e   :  { %2177 = vmatpush3.bf16.msra.mxu0 %v828_v32  ;;  %878 = vperm.xlu1 %2299, %v3052_v18  }
 0x2a1   :  { %890 = vperm.xlu0 %2300, %v3058_v3  }
 0x2a2   :  { %886 = vperm.xlu1 %2299, %v2680_v28  }
 0x2a5   :  { %898 = vperm.xlu0 %2300, %v3065_v7  }
 0x2a6   :  { %894 = vperm.xlu1 %2299, %v2695_v30  }
 0x2a7   :  { %v676_v14 = vpop.permute.xlu1 %675 }
 0x2a8   :  { %v721_v44 = vmul.f32 %v676_v14, %v2903_v15 }
 0x2a9   :  { %906 = vperm.xlu0 %2300, %v3073_v50  }
 0x2aa   :  { %v801_v28 = vadd.f32 %v2978_v26, %v721_v44  ;;  %902 = vperm.xlu1 %2299, %v2715_v43  }
 0x2ab   :  { %v681_v21 = vpop.permute.xlu0 %680 }
 0x2ac   :  { %v722_v63 = vmul.f32 %v681_v21, %v2908_v51  ;;  %v817_v22 = vmax.f32 %v801_v28, 0.0 }
 0x2ae   :  { %v802_v54 = vadd.f32 %v2983_v5, %v722_v63  ;;  %910 = vperm.xlu1 %2299, %v2757_v4  }
 0x2b0   :  { %v818_v15 = vmax.f32 %v802_v54, 0.0 }
 0x2b2   :  { %v829_v30 = vpack.c.bf16 %v818_v15, %v817_v22 }
 0x2b4   :  { %2178 = vmatprep.subr.bf16.mxu0 %v829_v30 }
 0x2b5   :  { %2179 = vmatpush3.bf16.msra.mxu0 %v829_v30 }
 0x2be   :  { %v686_v37 = vpop.permute.xlu0 %685 }
 0x2bf   :  { %v723_v56 = vmul.f32 %v686_v37, %v2913_v45 }
 0x2c1   :  { %v803_v9 = vadd.f32 %v2987_v20, %v723_v56 }
 0x2c2   :  { %v691_v2 = vpop.permute.xlu1 %690 }
 0x2c3   :  { %v724_v26 = vmul.f32 %v691_v2, %v2918_v52  ;;  %v819_v43 = vmax.f32 %v803_v9, 0.0 }
 0x2c5   :  { %v804_v51 = vadd.f32 %v2985_v8, %v724_v26 }
 0x2c7   :  { %v820_v10 = vmax.f32 %v804_v51, 0.0 }
 0x2c9   :  { %v830_v5 = vpack.c.bf16 %v820_v10, %v819_v43 }
 0x2cb   :  { %2180 = vmatprep.subr.bf16.mxu0 %v830_v5 }
 0x2cc   :  { %2181 = vmatpush3.bf16.msra.mxu0 %v830_v5 }
 0x2d5   :  { %v696_v53 = vpop.permute.xlu1 %695 }
 0x2d6   :  { %v725_v4 = vmul.f32 %v696_v53, %v2923_v6 }
 0x2d8   :  { %v805_v31 = vadd.f32 %v2989_v23, %v725_v4 }
 0x2d9   :  { %v701_v62 = vpop.permute.xlu0 %700 }
 0x2da   :  { %v726_v45 = vmul.f32 %v701_v62, %v2928_v40  ;;  %v821_v20 = vmax.f32 %v805_v31, 0.0 }
 0x2dc   :  { %v806_v16 = vadd.f32 %v2991_v27, %v726_v45  ;;  %v2323_v27 = vld [vmem:[%s3612_s3 + $0x8] sm:$0xff]  }
 0x2de   :  { %v822_v0 = vmax.f32 %v806_v16, 0.0 }
 0x2e0   :  { %v831_v52 = vpack.c.bf16 %v822_v0, %v821_v20  ;;  %v711_v48 = vpop.permute.xlu1 %710 }
 0x2e1   :  { %v728_v24 = vmul.f32 %v711_v48, %v2933_v38  ;;  %v2325_v38 = vld [vmem:[%s3612_s3 + $0x18] sm:$0xff]  }
 0x2e2   :  { %2182 = vmatprep.subr.bf16.mxu0 %v831_v52 }
 0x2e3   :  { %2183 = vmatpush3.bf16.msra.mxu0 %v831_v52 }
 0x2e5   :  { %v791_v39 = vpop.permute.xlu1 %790 }
 0x2e6   :  { %v808_v47 = vadd.f32 %v791_v39, %v728_v24 }
 0x2e7   :  { %v706_v8 = vpop.permute.xlu0 %705 }
 0x2e8   :  { %v727_v6 = vmul.f32 %v706_v8, %v2938_v55  ;;  %v824_v23 = vmax.f32 %v808_v47, 0.0  ;;  %v2326_v55 = vld [vmem:[%s3612_s3 + $0x20] sm:$0xff]  }
 0x2ec   :  { %v787_v35 = vpop.permute.xlu0 %786 }
 0x2ed   :  { %v807_v42 = vadd.f32 %v787_v35, %v727_v6 }
 0x2ef   :  { %v823_v57 = vmax.f32 %v807_v42, 0.0 }
 0x2f1   :  { %v832_v40 = vpack.c.bf16 %v824_v23, %v823_v57 }
 0x2f3   :  { %2184 = vmatprep.subr.bf16.mxu0 %v832_v40 }
 0x2f4   :  { %2185 = vmatpush3.bf16.msra.mxu0 %v832_v40 }
 0x2f7   :  { %2187 = vmatmul.mubr.bf16.vlgmr.msra.gmra.mrb[0].mxu0 %v2323_v27 }
 0x2f8   :  { %2190 = vmatprep.mubr.bf16.mxu0 %v2324_v41 }
 0x2ff   :  { %2191 = vmatmul.mubr.bf16.gmra.mrb[4].mxu0 %v2325_v38 }
 0x300   :  { %2194 = vmatprep.mubr.bf16.mxu0 %v2326_v55  ;;  %v2491_v55 = vmov 5  }
 0x301   :  { %2301 = vset.pattern.permute.xlu1 %v2491_v55  ;;  %2302 = vset.pattern.permute.xlu0 %v2491_v55 }
 0x307   :  { %2195 = vmatmul.mubr.bf16.gmra.mrb[8].mxu0 %v2327_v61 }
 0x308   :  { %2198 = vmatprep.mubr.bf16.mxu0 %v2328_v12 }
 0x30c   :  { %v851_v1 = vpop.permute.xlu1 %850 }
 0x30f   :  { %2199 = vmatmul.mubr.bf16.gmra.mrb[12].mxu0 %v2329_v46 }
 0x310   :  { %v855_v59 = vpop.permute.xlu0 %854 }
 0x311   :  { %v859_v34 = vpop.permute.xlu1 %858 }
 0x314   :  { %v867_v58 = vpop.permute.xlu0 %866 }
 0x315   :  { %v863_v13 = vpop.permute.xlu1 %862 }
 0x318   :  { %v875_v54 = vpop.permute.xlu0 %874 }
 0x319   :  { %v871_v21 = vpop.permute.xlu1 %870 }
 0x31c   :  { %v883_v26 = vpop.permute.xlu0 %882 }
 0x31d   :  { %v879_v30 = vpop.permute.xlu1 %878 }
 0x320   :  { %v891_v4 = vpop.permute.xlu0 %890 }
 0x321   :  { %v887_v5 = vpop.permute.xlu1 %886 }
 0x324   :  { %v899_v8 = vpop.permute.xlu0 %898 }
 0x325   :  { %v895_v0 = vpop.permute.xlu1 %894 }
 0x328   :  { %v907_v57 = vpop.permute.xlu0 %906 }
 0x329   :  { %v903_v42 = vpop.permute.xlu1 %902 }
 0x32d   :  { %v911_v41 = vpop.permute.xlu1 %910 }
 0x3ca   :  { %v2188_v36 = vpop.f32.mrb[0].mxu0 }
 0x3cb   :  { %v995_v32 = vpop.f32.mrb[1].mxu0  ;;  %v1004_v22 = vadd.f32 %v2188_v36, %v859_v34 }
 0x3cc   :  { %v3112_v14 = vadd.f32 %v995_v32, %v851_v1  ;;  %v2189_v44 = vpop.f32.mrb[2].mxu0 }
 0x3cd   :  { %v998_v28 = vpop.f32.mrb[3].mxu0  ;;  %v1007_v56 = vadd.f32 %v2189_v44, %v863_v13 }
 0x3ce   :  { %v999_v63 = vadd.f32 %v998_v28, %v855_v59  ;;  %1058 = vadd.xlane.f32.xlu0 %v3112_v14 }
 0x3d0   :  { %1060 = vadd.xlane.f32.xlu1 %v999_v63 }
 0x3d2   :  { %v2192_v15 = vpop.f32.mrb[4].mxu0  ;;  %1062 = vadd.xlane.f32.xlu0 %v1004_v22 }
 0x3d3   :  { %v1011_v37 = vpop.f32.mrb[5].mxu0  ;;  %v3118_v43 = vadd.f32 %v2192_v15, %v875_v54 }
 0x3d4   :  { %v3115_v2 = vadd.f32 %v1011_v37, %v867_v58  ;;  %v2193_v9 = vpop.f32.mrb[6].mxu0 }
 0x3d5   :  { %v1014_v51 = vpop.f32.mrb[7].mxu0  ;;  %v3124_v31 = vadd.f32 %v2193_v9, %v879_v30 }
 0x3d6   :  { %1066 = vadd.xlane.f32.xlu1 %v3115_v2  ;;  %1064 = vadd.xlane.f32.xlu0 %v1007_v56  ;;  %v3120_v10 = vadd.f32 %v1014_v51, %v871_v21 }
 0x3da   :  { %v2196_v53 = vpop.f32.mrb[8].mxu0  ;;  %1070 = vadd.xlane.f32.xlu1 %v3118_v43  ;;  %1068 = vadd.xlane.f32.xlu0 %v3120_v10 }
 0x3db   :  { %v1027_v62 = vpop.f32.mrb[9].mxu0  ;;  %v3130_v52 = vadd.f32 %v2196_v53, %v891_v4 }
 0x3dc   :  { %v3126_v45 = vadd.f32 %v1027_v62, %v883_v26  ;;  %v2197_v16 = vpop.f32.mrb[10].mxu0 }
 0x3dd   :  { %v1030_v20 = vpop.f32.mrb[11].mxu0  ;;  %v3136_v47 = vadd.f32 %v2197_v16, %v895_v0 }
 0x3de   :  { %1074 = vadd.xlane.f32.xlu1 %v3126_v45  ;;  %1072 = vadd.xlane.f32.xlu0 %v3124_v31  ;;  %v3132_v48 = vadd.f32 %v1030_v20, %v887_v5 }
 0x3e2   :  { %v2200_v39 = vpop.f32.mrb[12].mxu0  ;;  %1078 = vadd.xlane.f32.xlu1 %v3130_v52  ;;  %1076 = vadd.xlane.f32.xlu0 %v3132_v48 }
 0x3e3   :  { %v1043_v24 = vpop.f32.mrb[13].mxu0  ;;  %v3142_v40 = vadd.f32 %v2200_v39, %v907_v57 }
 0x3e4   :  { %v3138_v6 = vadd.f32 %v1043_v24, %v899_v8  ;;  %v2201_v35 = vpop.f32.mrb[14].mxu0 }
 0x3e5   :  { %v1046_v23 = vpop.f32.mrb[15].mxu0  ;;  %v3148_v38 = vadd.f32 %v2201_v35, %v911_v41 }
 0x3e6   :  { %1082 = vadd.xlane.f32.xlu1 %v3138_v6  ;;  %1080 = vadd.xlane.f32.xlu0 %v3136_v47  ;;  %v3144_v27 = vadd.f32 %v1046_v23, %v903_v42 }
 0x3ea   :  { %1086 = vadd.xlane.f32.xlu1 %v3142_v40  ;;  %1084 = vadd.xlane.f32.xlu0 %v3144_v27 }
 0x3ee   :  { %1088 = vadd.xlane.f32.xlu0 %v3148_v38 }
 0x45b   :  { %v1059_v61 = vpop.xlane.xlu0 %1058 }
 0x45c   :  { %v1090_v1 = vmul.f32 0.0078125, %v1059_v61 }
 0x45d   :  { %v1061_v12 = vpop.xlane.xlu1 %1060 }
 0x45e   :  { %v1091_v46 = vmul.f32 0.0078125, %v1061_v12  ;;  %v3160_v32 = vsub.f32 %v3112_v14, %v1090_v1 }
 0x45f   :  { %v1063_v34 = vpop.xlane.xlu0 %1062 }
 0x460   :  { %v3153_v59 = vsub.f32 %v999_v63, %v1091_v46  ;;  %v1092_v13 = vmul.f32 0.0078125, %v1063_v34 }
 0x462   :  { %v3155_v58 = vsub.f32 %v1004_v22, %v1092_v13  ;;  %v1123_v36 = vmul.f32 %v3153_v59, %v3153_v59  ;;  %v1122_v22 = vmul.f32 %v3160_v32, %v3160_v32 }
 0x463   :  { %v1065_v44 = vpop.xlane.xlu0 %1064  ;;  %v1067_v21 = vpop.xlane.xlu1 %1066 }
 0x464   :  { %v1093_v28 = vmul.f32 0.0078125, %v1065_v44  ;;  %1140 = vadd.xlane.f32.xlu0 %v1123_v36  ;;  %v1124_v54 = vmul.f32 %v3155_v58, %v3155_v58  ;;  %v1094_v37 = vmul.f32 0.0078125, %v1067_v21 }
 0x466   :  { %v3164_v15 = vsub.f32 %v1007_v56, %v1093_v28  ;;  %1142 = vadd.xlane.f32.xlu1 %v1124_v54  ;;  %v3177_v4 = vsub.f32 %v3115_v2, %v1094_v37 }
 0x467   :  { %v1069_v63 = vpop.xlane.xlu0 %1068  ;;  %v1071_v30 = vpop.xlane.xlu1 %1070 }
 0x468   :  { %v1095_v9 = vmul.f32 0.0078125, %v1069_v63  ;;  %v1096_v26 = vmul.f32 0.0078125, %v1071_v30  ;;  %v1125_v14 = vmul.f32 %v3164_v15, %v3164_v15  ;;  %v1126_v35 = vmul.f32 %v3177_v4, %v3177_v4 }
 0x46a   :  { %v3171_v51 = vsub.f32 %v3120_v10, %v1095_v9  ;;  %v3174_v5 = vsub.f32 %v3118_v43, %v1096_v26  ;;  %1138 = vadd.xlane.f32.xlu1 %v1122_v22  ;;  %1144 = vadd.xlane.f32.xlu0 %v1125_v14  ;;  %v3250_v9 = vld [vmem:[%s3614_s5 + $0x58] sm:$0xff] }
 0x46b   :  { %v1073_v56 = vpop.xlane.xlu0 %1072  ;;  %v1075_v53 = vpop.xlane.xlu1 %1074 }
 0x46c   :  { %v1097_v62 = vmul.f32 0.0078125, %v1073_v56  ;;  %v1127_v16 = vmul.f32 %v3171_v51, %v3171_v51  ;;  %v1128_v20 = vmul.f32 %v3174_v5, %v3174_v5  ;;  %v1098_v43 = vmul.f32 0.0078125, %v1075_v53 }
 0x46e   :  { %v3184_v10 = vsub.f32 %v3124_v31, %v1097_v62  ;;  %1148 = vadd.xlane.f32.xlu0 %v1127_v16  ;;  %1150 = vadd.xlane.f32.xlu1 %v1128_v20  ;;  %v3197_v31 = vsub.f32 %v3126_v45, %v1098_v43 }
 0x46f   :  { %v1077_v0 = vpop.xlane.xlu0 %1076  ;;  %v1079_v8 = vpop.xlane.xlu1 %1078 }
 0x470   :  { %v1099_v39 = vmul.f32 0.0078125, %v1077_v0  ;;  %v1100_v24 = vmul.f32 0.0078125, %v1079_v8  ;;  %v1129_v2 = vmul.f32 %v3184_v10, %v3184_v10  ;;  %v1130_v45 = vmul.f32 %v3197_v31, %v3197_v31 }
 0x472   :  { %v3191_v42 = vsub.f32 %v3132_v48, %v1099_v39  ;;  %v3194_v23 = vsub.f32 %v3130_v52, %v1100_v24  ;;  %1152 = vadd.xlane.f32.xlu0 %v1129_v2  ;;  %1146 = vadd.xlane.f32.xlu1 %v1126_v35 }
 0x473   :  { %v1081_v57 = vpop.xlane.xlu0 %1080  ;;  %v1083_v41 = vpop.xlane.xlu1 %1082 }
 0x474   :  { %v1101_v61 = vmul.f32 0.0078125, %v1081_v57  ;;  %v1131_v12 = vmul.f32 %v3191_v42, %v3191_v42  ;;  %v1132_v46 = vmul.f32 %v3194_v23, %v3194_v23  ;;  %v1102_v34 = vmul.f32 0.0078125, %v1083_v41 }
 0x476   :  { %v3204_v48 = vsub.f32 %v3136_v47, %v1101_v61  ;;  %1156 = vadd.xlane.f32.xlu0 %v1131_v12  ;;  %1158 = vadd.xlane.f32.xlu1 %v1132_v46  ;;  %v3217_v54 = vsub.f32 %v3138_v6, %v1102_v34  ;;  %v2492_v6 = vmov 4  }
 0x477   :  { %v1085_v52 = vpop.xlane.xlu0 %1084  ;;  %v1087_v1 = vpop.xlane.xlu1 %1086 }
 0x478   :  { %v1103_v13 = vmul.f32 0.0078125, %v1085_v52  ;;  %v1104_v36 = vmul.f32 0.0078125, %v1087_v1  ;;  %v1133_v44 = vmul.f32 %v3204_v48, %v3204_v48 }
 0x47a   :  { %v3211_v21 = vsub.f32 %v3144_v27, %v1103_v13  ;;  %v3214_v28 = vsub.f32 %v3142_v40, %v1104_v36  ;;  %1160 = vadd.xlane.f32.xlu0 %v1133_v44  ;;  %1154 = vadd.xlane.f32.xlu1 %v1130_v45  ;;  %v1134_v27 = vmul.f32 %v3217_v54, %v3217_v54 }
 0x47b   :  { %v1089_v47 = vpop.xlane.xlu0 %1088 }
 0x47c   :  { %v1105_v63 = vmul.f32 0.0078125, %v1089_v47  ;;  %v1135_v30 = vmul.f32 %v3211_v21, %v3211_v21  ;;  %v1136_v22 = vmul.f32 %v3214_v28, %v3214_v28 }
 0x47e   :  { %v3224_v37 = vsub.f32 %v3148_v38, %v1105_v63  ;;  %1164 = vadd.xlane.f32.xlu0 %v1135_v30  ;;  %1166 = vadd.xlane.f32.xlu1 %v1136_v22  ;;  %v3243_v38 = vld [vmem:[%s3614_s5 + $0x48] sm:$0xff] }
 0x480   :  { %v1137_v40 = vmul.f32 %v3224_v37, %v3224_v37 }
 0x482   :  { %1168 = vadd.xlane.f32.xlu0 %v1137_v40  ;;  %1162 = vadd.xlane.f32.xlu1 %v1134_v27 }
 0x493   :  { %1331 = vperm.xlu1 %2301, %v3002_v60  }
 0x497   :  { %1335 = vperm.xlu1 %2301, %v3008_v29  }
 0x498   :  { %1347 = vperm.xlu0 %2302, %v3022_v25  }
 0x49b   :  { %1339 = vperm.xlu1 %2301, %v3016_v11  }
 0x49c   :  { %1363 = vperm.xlu0 %2302, %v3046_v19  }
 0x49f   :  { %1343 = vperm.xlu1 %2301, %v3028_v17  }
 0x4a0   :  { %2304 = vset.pattern.permute.xlu0 %v2492_v6 }
 0x4a3   :  { %1351 = vperm.xlu1 %2301, %v3040_v49  }
 0x4a7   :  { %1355 = vperm.xlu1 %2301, %v3034_v33  }
 0x4ab   :  { %1359 = vperm.xlu1 %2301, %v3052_v18  }
 0x4af   :  { %1367 = vperm.xlu1 %2301, %v3243_v38  }
 0x4b3   :  { %1371 = vperm.xlu1 %2301, %v3058_v3  }
 0x4b7   :  { %1375 = vperm.xlu1 %2301, %v3250_v9  }
 0x4bb   :  { %2303 = vset.pattern.permute.xlu1 %v2492_v6 }
 0x4f1   :  { %v1141_v26 = vpop.xlane.xlu0 %1140 }
 0x4f2   :  { %v1171_v14 = vmul.f32 0.0078125, %v1141_v26 }
 0x4f3   :  { %v1143_v56 = vpop.xlane.xlu1 %1142 }
 0x4f4   :  { %v1187_v53 = vadd.f32 1e-05, %v1171_v14  ;;  %v1172_v62 = vmul.f32 0.0078125, %v1143_v56 }
 0x4f6   :  { %2370 = vrsqrt.f32 %v1187_v53  ;;  %v1188_v16 = vadd.f32 1e-05, %v1172_v62 }
 0x4f7   :  { %v1145_v20 = vpop.xlane.xlu0 %1144  ;;  %v1139_v43 = vpop.xlane.xlu1 %1138 }
 0x4f8   :  { %2372 = vrsqrt.f32 %v1188_v16  ;;  %v1173_v0 = vmul.f32 0.0078125, %v1145_v20  ;;  %v1170_v8 = vmul.f32 0.0078125, %v1139_v43 }
 0x4fa   :  { %v1186_v39 = vadd.f32 1e-05, %v1170_v8  ;;  %v1189_v24 = vadd.f32 1e-05, %v1173_v0 }
 0x4fb   :  { %v1149_v2 = vpop.xlane.xlu0 %1148  ;;  %v1151_v35 = vpop.xlane.xlu1 %1150 }
 0x4fc   :  { %2374 = vrsqrt.f32 %v1186_v39  ;;  %v1176_v46 = vmul.f32 0.0078125, %v1151_v35  ;;  %v1175_v53 = vmul.f32 0.0078125, %v1149_v2 }
 0x4fd   :  { %2376 = vrsqrt.f32 %v1189_v24 }
 0x4fe   :  { %v1192_v47 = vadd.f32 1e-05, %v1176_v46  ;;  %v1191_v39 = vadd.f32 1e-05, %v1175_v53 }
 0x4ff   :  { %v1153_v57 = vpop.xlane.xlu0 %1152  ;;  %v1147_v41 = vpop.xlane.xlu1 %1146 }
 0x500   :  { %v2371_v61 = vpop.eup %2370  ;;  %v1177_v12 = vmul.f32 0.0078125, %v1153_v57  ;;  %v1174_v44 = vmul.f32 0.0078125, %v1147_v41 }
 0x501   :  { %v1219_v52 = vmul.f32 %v3008_v29, %v2371_v61 }
 0x502   :  { %v2373_v1 = vpop.eup %2372  ;;  %v1193_v45 = vadd.f32 1e-05, %v1177_v12  ;;  %v1190_v40 = vadd.f32 1e-05, %v1174_v44 }
 0x503   :  { %1241 = vperm.xlu0 %2304, %v1219_v52   ;;  %v1157_v34 = vpop.xlane.xlu0 %1156  ;;  %v1159_v13 = vpop.xlane.xlu1 %1158  ;;  %v1220_v36 = vmul.f32 %v3016_v11, %v2373_v1 }
 0x504   :  { %2378 = vrsqrt.f32 %v1193_v45  ;;  %v1180_v0 = vmul.f32 0.0078125, %v1159_v13  ;;  %v1179_v46 = vmul.f32 0.0078125, %v1157_v34  ;;  %v3266_v13 = vld [vmem:[%s3614_s5 + $0x68] sm:$0xff] }
 0x505   :  { %1246 = vperm.xlu1 %2303, %v1220_v36   ;;  %2380 = vrsqrt.f32 %v1192_v47 }
 0x506   :  { %v2375_v63 = vpop.eup %2374  ;;  %2382 = vrsqrt.f32 %v1190_v40  ;;  %v1196_v41 = vadd.f32 1e-05, %v1180_v0  ;;  %v1195_v36 = vadd.f32 1e-05, %v1179_v46 }
 0x507   :  { %v1161_v30 = vpop.xlane.xlu0 %1160  ;;  %v1155_v22 = vpop.xlane.xlu1 %1154  ;;  %2305 = vset.pattern.permute.xlu0 %v2491_v55  ;;  %v1218_v14 = vmul.f32 %v3002_v60, %v2375_v63 }
 0x508   :  { %v1181_v27 = vmul.f32 0.0078125, %v1161_v30  ;;  %v1178_v26 = vmul.f32 0.0078125, %v1155_v22  ;;  %1379 = vperm.xlu0 %2305, %v3065_v7   ;;  %v2377_v56 = vpop.eup %2376 }
 0x509   :  { %1236 = vperm.xlu1 %2303, %v1218_v14   ;;  %v1221_v8 = vmul.f32 %v3028_v17, %v2377_v56 }
 0x50a   :  { %v1194_v62 = vadd.f32 1e-05, %v1178_v26  ;;  %v1197_v16 = vadd.f32 1e-05, %v1181_v27 }
 0x50b   :  { %v1165_v20 = vpop.xlane.xlu0 %1164  ;;  %v1167_v43 = vpop.xlane.xlu1 %1166 }
 0x50c   :  { %2308 = vset.pattern.permute.xlu0 %v2492_v6  ;;  %2384 = vrsqrt.f32 %v1194_v62  ;;  %v1184_v44 = vmul.f32 0.0078125, %v1167_v43  ;;  %v1183_v40 = vmul.f32 0.0078125, %v1165_v20 }
 0x50d   :  { %1251 = vperm.xlu1 %2303, %v1221_v8   ;;  %2386 = vrsqrt.f32 %v1197_v16 }
 0x50e   :  { %v2379_v24 = vpop.eup %2378  ;;  %2388 = vrsqrt.f32 %v1191_v39  ;;  %v1200_v27 = vadd.f32 1e-05, %v1184_v44  ;;  %v1199_v53 = vadd.f32 1e-05, %v1183_v40  ;;  %v3280_v39 = vld [vmem:[%s3614_s5 + $0x78] sm:$0xff] }
 0x50f   :  { %v1169_v35 = vpop.xlane.xlu0 %1168  ;;  %v1163_v57 = vpop.xlane.xlu1 %1162  ;;  %v1225_v2 = vmul.f32 %v3052_v18, %v2379_v24  ;;  %2390 = vrsqrt.f32 %v1196_v41 }
 0x510   :  { %v1185_v61 = vmul.f32 0.0078125, %v1169_v35  ;;  %v1182_v12 = vmul.f32 0.0078125, %v1163_v57  ;;  %v2381_v1 = vpop.eup %2380 }
 0x511   :  { %1271 = vperm.xlu0 %2308, %v1225_v2   ;;  %2306 = vset.pattern.permute.xlu1 %v2491_v55  ;;  %v2383_v47 = vpop.eup %2382  ;;  %v1224_v34 = vmul.f32 %v3034_v33, %v2381_v1 }
 0x512   :  { %v1198_v52 = vadd.f32 1e-05, %v1182_v12  ;;  %v1201_v45 = vadd.f32 1e-05, %v1185_v61  ;;  %1383 = vperm.xlu1 %2306, %v3266_v13   ;;  %v1222_v26 = vmul.f32 %v3022_v25, %v2383_v47  ;;  %v2330_v12 = vld [vmem:[%s3612_s3 + $0x40] sm:$0xff]  }
 0x513   :  { %2218 = vmatprep.mubr.bf16.mxu1 %v2330_v12  ;;  %v1332_v46 = vpop.permute.xlu1 %1331 }
 0x514   :  { %2392 = vrsqrt.f32 %v1198_v52 }
 0x515   :  { %2394 = vrsqrt.f32 %v1201_v45 }
 0x516   :  { %v2385_v63 = vpop.eup %2384  ;;  %2307 = vset.pattern.permute.xlu1 %v2492_v6  ;;  %2396 = vrsqrt.f32 %v1195_v36  ;;  %v2493_v36 = vmov 6  }
 0x517   :  { %1266 = vperm.xlu1 %2307, %v1224_v34   ;;  %v1226_v30 = vmul.f32 %v3046_v19, %v2385_v63  ;;  %v2387_v22 = vpop.eup %2386  ;;  %2398 = vrsqrt.f32 %v1200_v27  ;;  %v1336_v52 = vpop.permute.xlu1 %1335 }
 0x518   :  { %v2389_v14 = vpop.eup %2388  ;;  %v1229_v56 = vmul.f32 %v3250_v9, %v2387_v22  ;;  %2400 = vrsqrt.f32 %v1199_v53 }
 0x519   :  { %1276 = vperm.xlu0 %2308, %v1226_v30   ;;  %v2391_v62 = vpop.eup %2390  ;;  %v1223_v6 = vmul.f32 %v3040_v49, %v2389_v14 }
 0x51a   :  { %v1228_v20 = vmul.f32 %v3058_v3, %v2391_v62 }
 0x51b   :  { %1256 = vperm.xlu1 %2307, %v1222_v26   ;;  %v1340_v1 = vpop.permute.xlu1 %1339 }
 0x51d   :  { %1291 = vperm.xlu0 %2308, %v1229_v56  }
 0x51e   :  { %v2393_v16 = vpop.eup %2392 }
 0x51f   :  { %1261 = vperm.xlu1 %2307, %v1223_v6   ;;  %v1230_v43 = vmul.f32 %v3065_v7, %v2393_v16  ;;  %v2395_v0 = vpop.eup %2394  ;;  %v1344_v45 = vpop.permute.xlu1 %1343 }
 0x520   :  { %v2397_v8 = vpop.eup %2396  ;;  %v1233_v24 = vmul.f32 %v3280_v39, %v2395_v0 }
 0x521   :  { %1296 = vperm.xlu0 %2308, %v1230_v43   ;;  %v1227_v35 = vmul.f32 %v3243_v38, %v2397_v8  ;;  %v2399_v57 = vpop.eup %2398 }
 0x522   :  { %v1232_v2 = vmul.f32 %v3073_v50, %v2399_v57  ;;  %v2401_v41 = vpop.eup %2400 }
 0x523   :  { %1286 = vperm.xlu1 %2307, %v1228_v20   ;;  %v1231_v61 = vmul.f32 %v3266_v13, %v2401_v41 }
 0x525   :  { %1311 = vperm.xlu0 %2308, %v1233_v24  }
 0x527   :  { %1281 = vperm.xlu1 %2307, %v1227_v35  }
 0x529   :  { %2310 = vset.pattern.permute.xlu0 %v2493_v36 }
 0x52a   :  { %1452 = vperm.xlu0 %2310, %v3002_v60  }
 0x52b   :  { %1306 = vperm.xlu1 %2307, %v1232_v2  }
 0x52e   :  { %1464 = vperm.xlu0 %2310, %v3028_v17  }
 0x52f   :  { %1301 = vperm.xlu1 %2307, %v1231_v61  }
 0x532   :  { %1472 = vperm.xlu0 %2310, %v3040_v49  }
 0x533   :  { %2309 = vset.pattern.permute.xlu1 %v2491_v55  ;;  %v1352_v55 = vpop.permute.xlu1 %1351 }
 0x534   :  { %1387 = vperm.xlu1 %2309, %v3073_v50  }
 0x536   :  { %1480 = vperm.xlu0 %2310, %v3052_v18  }
 0x537   :  { %v1356_v44 = vpop.permute.xlu1 %1355 }
 0x538   :  { %1391 = vperm.xlu1 %2309, %v3280_v39  }
 0x53a   :  { %1488 = vperm.xlu0 %2310, %v3243_v38  }
 0x53b   :  { %v1360_v60 = vpop.permute.xlu1 %1359 }
 0x53c   :  { %2311 = vset.pattern.permute.xlu1 %v2493_v36 }
 0x53d   :  { %1456 = vperm.xlu1 %2311, %v3008_v29  }
 0x53e   :  { %1496 = vperm.xlu0 %2310, %v3250_v9  }
 0x53f   :  { %v3304_v29 = vpop.permute.xlu1 %1367 }
 0x541   :  { %1460 = vperm.xlu1 %2311, %v3016_v11   ;;  %v1348_v11 = vpop.permute.xlu0 %1347 }
 0x542   :  { %1504 = vperm.xlu0 %2310, %v3266_v13  }
 0x545   :  { %1468 = vperm.xlu1 %2311, %v3022_v25   ;;  %v1372_v25 = vpop.permute.xlu1 %1371  ;;  %v1364_v17 = vpop.permute.xlu0 %1363 }
 0x546   :  { %1512 = vperm.xlu0 %2310, %v3280_v39  }
 0x549   :  { %1476 = vperm.xlu1 %2311, %v3034_v33   ;;  %v1376_v33 = vpop.permute.xlu1 %1375 }
 0x54d   :  { %1484 = vperm.xlu1 %2311, %v3046_v19  }
 0x551   :  { %1492 = vperm.xlu1 %2311, %v3058_v3  }
 0x555   :  { %1500 = vperm.xlu1 %2311, %v3065_v7  }
 0x559   :  { %1508 = vperm.xlu1 %2311, %v3073_v50  }
 0x582   :  { %v1242_v49 = vpop.permute.xlu0 %1241 }
 0x583   :  { %v1315_v18 = vmul.f32 %v1242_v49, %v3153_v59 }
 0x584   :  { %v1247_v19 = vpop.permute.xlu1 %1246 }
 0x585   :  { %v1395_v3 = vadd.f32 %v1336_v52, %v1315_v18  ;;  %v1316_v34 = vmul.f32 %v1247_v19, %v3155_v58 }
 0x587   :  { %v1411_v22 = vmax.f32 %v1395_v3, 0.0  ;;  %v1396_v40 = vadd.f32 %v1340_v1, %v1316_v34  ;;  %v1380_v59 = vpop.permute.xlu0 %1379 }
 0x588   :  { %v1237_v47 = vpop.permute.xlu1 %1236 }
 0x589   :  { %v1314_v63 = vmul.f32 %v1237_v47, %v3160_v32  ;;  %v1412_v56 = vmax.f32 %v1396_v40, 0.0 }
 0x58b   :  { %v1394_v30 = vadd.f32 %v1332_v46, %v1314_v63 }
 0x58c   :  { %v1252_v7 = vpop.permute.xlu1 %1251 }
 0x58d   :  { %v1317_v27 = vmul.f32 %v1252_v7, %v3164_v15  ;;  %v1410_v50 = vmax.f32 %v1394_v30, 0.0 }
 0x58f   :  { %v1397_v26 = vadd.f32 %v1344_v45, %v1317_v27  ;;  %v1426_v14 = vpack.c.bf16 %v1411_v22, %v1410_v50 }
 0x590   :  { %v1272_v32 = vpop.permute.xlu0 %1271 }
 0x591   :  { %v1413_v53 = vmax.f32 %v1397_v26, 0.0  ;;  %2202 = vmatprep.subr.bf16.mxu1 %v1426_v14  ;;  %v1384_v62 = vpop.permute.xlu1 %1383  ;;  %v1321_v20 = vmul.f32 %v1272_v32, %v3184_v10  ;;  %v2336_v32 = vld [vmem:[%s3612_s3 + $0x70] sm:$0xff]  }
 0x592   :  { %2203 = vmatpush3.bf16.msra.mxu1 %v1426_v14 }
 0x593   :  { %v1427_v6 = vpack.c.bf16 %v1413_v53, %v1412_v56  ;;  %v1401_v2 = vadd.f32 %v1360_v60, %v1321_v20 }
 0x595   :  { %2204 = vmatprep.subr.bf16.mxu1 %v1427_v6 }
 0x596   :  { %2205 = vmatpush3.bf16.msra.mxu1 %v1427_v6  ;;  %v1267_v58 = vpop.permute.xlu1 %1266  ;;  %v2334_v6 = vld [vmem:[%s3612_s3 + $0x60] sm:$0xff]  }
 0x597   :  { %v1320_v43 = vmul.f32 %v1267_v58, %v3174_v5  ;;  %v2335_v58 = vld [vmem:[%s3612_s3 + $0x68] sm:$0xff]  }
 0x598   :  { %v1277_v15 = vpop.permute.xlu0 %1276 }
 0x599   :  { %v1400_v24 = vadd.f32 %v1356_v44, %v1320_v43  ;;  %v1322_v61 = vmul.f32 %v1277_v15, %v3197_v31 }
 0x59a   :  { %v1257_v16 = vpop.permute.xlu1 %1256 }
 0x59b   :  { %v1318_v0 = vmul.f32 %v1257_v16, %v3177_v4  ;;  %v1416_v52 = vmax.f32 %v1400_v24, 0.0  ;;  %v1417_v4 = vmax.f32 %v1401_v2, 0.0  ;;  %v1402_v44 = vadd.f32 %v1364_v17, %v1322_v61  ;;  %v2337_v16 = vld [vmem:[%s3612_s3 + $0x78] sm:$0xff]  }
 0x59c   :  { %v1292_v12 = vpop.permute.xlu0 %1291 }
 0x59d   :  { %v1398_v35 = vadd.f32 %v1348_v11, %v1318_v0  ;;  %v1325_v36 = vmul.f32 %v1292_v12, %v3204_v48  ;;  %v1418_v47 = vmax.f32 %v1402_v44, 0.0 }
 0x59e   :  { %v1262_v8 = vpop.permute.xlu1 %1261 }
 0x59f   :  { %v1319_v57 = vmul.f32 %v1262_v8, %v3171_v51  ;;  %v1414_v1 = vmax.f32 %v1398_v35, 0.0  ;;  %v1405_v31 = vadd.f32 %v1376_v33, %v1325_v36 }
 0x5a0   :  { %v1297_v60 = vpop.permute.xlu0 %1296 }
 0x5a1   :  { %v1399_v41 = vadd.f32 %v1352_v55, %v1319_v57  ;;  %v1429_v55 = vpack.c.bf16 %v1417_v4, %v1416_v52  ;;  %v1421_v34 = vmax.f32 %v1405_v31, 0.0 }
 0x5a2   :  { %v1287_v46 = vpop.permute.xlu1 %1286 }
 0x5a3   :  { %v1415_v45 = vmax.f32 %v1399_v41, 0.0  ;;  %v1324_v5 = vmul.f32 %v1287_v46, %v3194_v23  ;;  %v1326_v23 = vmul.f32 %v1297_v60, %v3217_v54 }
 0x5a4   :  { %v1312_v7 = vpop.permute.xlu0 %1311 }
 0x5a5   :  { %v1428_v10 = vpack.c.bf16 %v1415_v45, %v1414_v1  ;;  %v1404_v11 = vadd.f32 %v1372_v25, %v1324_v5  ;;  %v1406_v63 = vadd.f32 %v1380_v59, %v1326_v23  ;;  %v1329_v50 = vmul.f32 %v1312_v7, %v3224_v37  ;;  %v2333_v37 = vld [vmem:[%s3612_s3 + $0x58] sm:$0xff]  }
 0x5a6   :  { %v1282_v49 = vpop.permute.xlu1 %1281 }
 0x5a7   :  { %v1323_v51 = vmul.f32 %v1282_v49, %v3191_v42  ;;  %2206 = vmatprep.subr.bf16.mxu1 %v1428_v10  ;;  %v1420_v3 = vmax.f32 %v1404_v11, 0.0 }
 0x5a8   :  { %2207 = vmatpush3.bf16.msra.mxu1 %v1428_v10 }
 0x5a9   :  { %v1403_v19 = vadd.f32 %v3304_v29, %v1323_v51  ;;  %2208 = vmatprep.subr.bf16.mxu1 %v1429_v55  ;;  %v1431_v30 = vpack.c.bf16 %v1421_v34, %v1420_v3  ;;  %v1422_v29 = vmax.f32 %v1406_v63, 0.0  ;;  %v1453_v43 = vpop.permute.xlu0 %1452 }
 0x5aa   :  { %v1307_v18 = vpop.permute.xlu1 %1306 }
 0x5ab   :  { %v1419_v48 = vmax.f32 %v1403_v19, 0.0  ;;  %v1328_v54 = vmul.f32 %v1307_v18, %v3214_v28  ;;  %v2332_v28 = vld [vmem:[%s3612_s3 + $0x50] sm:$0xff]  }
 0x5ac   :  { %2209 = vmatpush3.bf16.msra.mxu1 %v1429_v55 }
 0x5ad   :  { %v1430_v17 = vpack.c.bf16 %v1419_v48, %v1418_v47  ;;  %v1465_v15 = vpop.permute.xlu0 %1464 }
 0x5ae   :  { %v1302_v25 = vpop.permute.xlu1 %1301 }
 0x5af   :  { %v1327_v42 = vmul.f32 %v1302_v25, %v3211_v21  ;;  %2210 = vmatprep.subr.bf16.mxu1 %v1430_v17 }
 0x5b0   :  { %2211 = vmatpush3.bf16.msra.mxu1 %v1430_v17 }
 0x5b1   :  { %v1407_v33 = vadd.f32 %v1384_v62, %v1327_v42  ;;  %2212 = vmatprep.subr.bf16.mxu1 %v1431_v30  ;;  %v2331_v62 = vld [vmem:[%s3612_s3 + $0x48] sm:$0xff]   ;;  %v1473_v8 = vpop.permute.xlu0 %1472  ;;  %s2088_s3 = sshll.u32 %s2499_s23, 4  ;;  %s2089_s3 = int_to_ptr.vmem [resolvable:$true] %s2088_s3 }
 0x5b2   :  { %s2463_s24 = scalar_lea.vmem %s2089_s3, 32  ;;  %p2468_p1 = scmp.lt.s32.totalorder %s2089_s3, %s2089_s3 }
 0x5b3   :  { %v1423_v22 = vmax.f32 %v1407_v33, 0.0  ;;  %v1388_v40 = vpop.permute.xlu1 %1387  ;;  %p2464_p0 = scmp.ne.s32.totalorder %s2089_s3, %s2463_s24  ;;  %p2469_p2 = scmp.lt.s32.totalorder %s2463_s24, %s2463_s24 }
 0x5b4   :  { %2213 = vmatpush3.bf16.msra.mxu1 %v1431_v30  ;;  %v1408_v26 = vadd.f32 %v1388_v40, %v1328_v54 }
 0x5b5   :  { %v1432_v27 = vpack.c.bf16 %v1423_v22, %v1422_v29  ;;  %v1481_v2 = vpop.permute.xlu0 %1480  ;;  %p2470_p3 = por %p2469_p2, %p2468_p1 }
 0x5b6   :  { %v1424_v21 = vmax.f32 %v1408_v26, 0.0 }
 0x5b7   :  { %2214 = vmatprep.subr.bf16.mxu1 %v1432_v27  ;;  %v1392_v14 = vpop.permute.xlu1 %1391  ;;  %p2471_p4 = pnand %p2470_p3, %p2464_p0 }
 0x5b8   :  { %v1409_v56 = vadd.f32 %v1392_v14, %v1329_v50  ;;  %2215 = vmatpush3.bf16.msra.mxu1 %v1432_v27  ;;  %v2494_v14 = vmov 8  }
 0x5b9   :  { %v1489_v45 = vpop.permute.xlu0 %1488  ;;  %2312 = vset.pattern.permute.xlu1 %v2494_v14  ;;  %2313 = vset.pattern.permute.xlu0 %v2494_v14 }
 0x5ba   :  { %v1425_v53 = vmax.f32 %v1409_v56, 0.0 }
 0x5bc   :  { %v1433_v59 = vpack.c.bf16 %v1425_v53, %v1424_v21  ;;  %v1457_v0 = vpop.permute.xlu1 %1456 }
 0x5bd   :  { %v1497_v55 = vpop.permute.xlu0 %1496 }
 0x5be   :  { %2216 = vmatprep.subr.bf16.mxu1 %v1433_v59 }
 0x5bf   :  { %2217 = vmatpush3.bf16.msra.mxu1 %v1433_v59 }
 0x5c0   :  { %v1461_v20 = vpop.permute.xlu1 %1460 }
 0x5c1   :  { %v1505_v34 = vpop.permute.xlu0 %1504 }
 0x5c2   :  { %2219 = vmatmul.mubr.bf16.vlgmr.msra.gmra.mrb[0].mxu1 %v2331_v62 }
 0x5c3   :  { %2222 = vmatprep.mubr.bf16.mxu1 %v2332_v28 }
 0x5c4   :  { %v1469_v35 = vpop.permute.xlu1 %1468 }
 0x5c5   :  { %v1513_v29 = vpop.permute.xlu0 %1512 }
 0x5c8   :  { %v1477_v1 = vpop.permute.xlu1 %1476 }
 0x5ca   :  { %2223 = vmatmul.mubr.bf16.gmra.mrb[4].mxu1 %v2333_v37 }
 0x5cb   :  { %2226 = vmatprep.mubr.bf16.mxu1 %v2334_v6 }
 0x5cc   :  { %v1485_v51 = vpop.permute.xlu1 %1484 }
 0x5d0   :  { %v1493_v23 = vpop.permute.xlu1 %1492 }
 0x5d2   :  { %2227 = vmatmul.mubr.bf16.gmra.mrb[8].mxu1 %v2335_v58 }
 0x5d3   :  { %2230 = vmatprep.mubr.bf16.mxu1 %v2336_v32 }
 0x5d4   :  { %v1501_v30 = vpop.permute.xlu1 %1500 }
 0x5d8   :  { %v1509_v27 = vpop.permute.xlu1 %1508 }
 0x5da   :  { %2231 = vmatmul.mubr.bf16.gmra.mrb[12].mxu1 %v2337_v16 }
 0x695   :  { %v2220_v24 = vpop.f32.mrb[0].mxu1 }
 0x696   :  { %v1597_v57 = vpop.f32.mrb[1].mxu1  ;;  %v1606_v5 = vadd.f32 %v2220_v24, %v1461_v20 }
 0x697   :  { %v1598_v41 = vadd.f32 %v1597_v57, %v1453_v43  ;;  %v2221_v61 = vpop.f32.mrb[2].mxu1 }
 0x698   :  { %v1600_v12 = vpop.f32.mrb[3].mxu1  ;;  %v1609_v52 = vadd.f32 %v2221_v61, %v1465_v15 }
 0x699   :  { %v3348_v46 = vadd.f32 %v1600_v12, %v1457_v0  ;;  %1660 = vadd.xlane.f32.xlu1 %v1598_v41 }
 0x69b   :  { %1662 = vadd.xlane.f32.xlu0 %v3348_v46 }
 0x69d   :  { %v2224_v4 = vpop.f32.mrb[4].mxu1  ;;  %1666 = vadd.xlane.f32.xlu1 %v1609_v52 }
 0x69e   :  { %v1613_v36 = vpop.f32.mrb[5].mxu1  ;;  %v3359_v31 = vadd.f32 %v2224_v4, %v1477_v1 }
 0x69f   :  { %v2225_v10 = vpop.f32.mrb[6].mxu1  ;;  %1664 = vadd.xlane.f32.xlu0 %v1606_v5  ;;  %v3353_v11 = vadd.f32 %v1613_v36, %v1469_v35 }
 0x6a0   :  { %v3351_v49 = vadd.f32 %v2225_v10, %v1481_v2  ;;  %v1616_v44 = vpop.f32.mrb[7].mxu1 }
 0x6a1   :  { %v3357_v60 = vadd.f32 %v1616_v44, %v1473_v8 }
 0x6a2   :  { %1674 = vadd.xlane.f32.xlu1 %v3351_v49 }
 0x6a3   :  { %1668 = vadd.xlane.f32.xlu0 %v3353_v11 }
 0x6a5   :  { %v2228_v19 = vpop.f32.mrb[8].mxu1 }
 0x6a6   :  { %v1629_v18 = vpop.f32.mrb[9].mxu1  ;;  %1670 = vadd.xlane.f32.xlu1 %v3357_v60  ;;  %v3371_v63 = vadd.f32 %v2228_v19, %v1493_v23 }
 0x6a7   :  { %v2229_v47 = vpop.f32.mrb[10].mxu1  ;;  %1672 = vadd.xlane.f32.xlu0 %v3359_v31  ;;  %v3365_v17 = vadd.f32 %v1629_v18, %v1485_v51 }
 0x6a8   :  { %v3363_v3 = vadd.f32 %v2229_v47, %v1497_v55  ;;  %v1632_v48 = vpop.f32.mrb[11].mxu1 }
 0x6a9   :  { %v3369_v25 = vadd.f32 %v1632_v48, %v1489_v45 }
 0x6aa   :  { %1682 = vadd.xlane.f32.xlu1 %v3363_v3 }
 0x6ab   :  { %1676 = vadd.xlane.f32.xlu0 %v3365_v17 }
 0x6ad   :  { %v2232_v42 = vpop.f32.mrb[12].mxu1 }
 0x6ae   :  { %v1645_v33 = vpop.f32.mrb[13].mxu1  ;;  %1678 = vadd.xlane.f32.xlu1 %v3369_v25  ;;  %v3383_v26 = vadd.f32 %v2232_v42, %v1509_v27 }
 0x6af   :  { %v2233_v7 = vpop.f32.mrb[14].mxu1  ;;  %1680 = vadd.xlane.f32.xlu0 %v3371_v63  ;;  %v3377_v54 = vadd.f32 %v1645_v33, %v1501_v30 }
 0x6b0   :  { %v3375_v22 = vadd.f32 %v2233_v7, %v1513_v29  ;;  %v1648_v40 = vpop.f32.mrb[15].mxu1 }
 0x6b1   :  { %v3381_v50 = vadd.f32 %v1648_v40, %v1505_v34 }
 0x6b2   :  { %1690 = vadd.xlane.f32.xlu1 %v3375_v22 }
 0x6b3   :  { %1684 = vadd.xlane.f32.xlu0 %v3377_v54 }
 0x6b6   :  { %1686 = vadd.xlane.f32.xlu1 %v3381_v50 }
 0x6b7   :  { %1688 = vadd.xlane.f32.xlu0 %v3383_v26 }
 0x726   :  { %v1661_v56 = vpop.xlane.xlu1 %1660 }
 0x727   :  { %v1692_v21 = vmul.f32 0.0078125, %v1661_v56 }
 0x728   :  { %v1663_v53 = vpop.xlane.xlu0 %1662 }
 0x729   :  { %v3389_v59 = vsub.f32 %v1598_v41, %v1692_v21  ;;  %v1693_v28 = vmul.f32 0.0078125, %v1663_v53  ;;  %v3465_v21 = vld [vmem:[%s3614_s5 + $0x8] sm:$0xff]  ;;  %v3477_v53 = vld [vmem:[%s3614_s5 + $0x20] sm:$0xff] }
 0x72a   :  { %v1667_v62 = vpop.xlane.xlu1 %1666 }
 0x72b   :  { %v1695_v37 = vmul.f32 0.0078125, %v1667_v62  ;;  %v1724_v6 = vmul.f32 %v3389_v59, %v3389_v59  ;;  %v3396_v43 = vsub.f32 %v3348_v46, %v1693_v28  ;;  %v3483_v62 = vld [vmem:[%s3614_s5 + $0x18] sm:$0xff]  ;;  %v3489_v28 = vld [vmem:[%s3614_s5 + $0x40] sm:$0xff] }
 0x72c   :  { %v1665_v58 = vpop.xlane.xlu0 %1664 }
 0x72d   :  { %v3393_v32 = vsub.f32 %v1609_v52, %v1695_v37  ;;  %v1694_v16 = vmul.f32 0.0078125, %v1665_v58  ;;  %1740 = vadd.xlane.f32.xlu0 %v1724_v6  ;;  %v1725_v12 = vmul.f32 %v3396_v43, %v3396_v43  ;;  %v3495_v37 = vld [vmem:[%s3614_s5 + $0x28] sm:$0xff]  ;;  %v2495_v6 = vmov 7   ;;  %v3502_v58 = vld [vmem:[%s3614_s5 + $0x30] sm:$0xff] }
 0x72f   :  { %v3398_v0 = vsub.f32 %v1606_v5, %v1694_v16  ;;  %v1675_v15 = vpop.xlane.xlu1 %1674  ;;  %v1727_v20 = vmul.f32 %v3393_v32, %v3393_v32 }
 0x730   :  { %v1699_v8 = vmul.f32 0.0078125, %v1675_v15  ;;  %v1669_v24 = vpop.xlane.xlu0 %1668 }
 0x731   :  { %v1696_v35 = vmul.f32 0.0078125, %v1669_v24  ;;  %1746 = vadd.xlane.f32.xlu1 %v1727_v20  ;;  %v1726_v57 = vmul.f32 %v3398_v0, %v3398_v0 }
 0x732   :  { %v3405_v2 = vsub.f32 %v3351_v49, %v1699_v8 }
 0x733   :  { %v3408_v41 = vsub.f32 %v3353_v11, %v1696_v35  ;;  %1744 = vadd.xlane.f32.xlu0 %v1726_v57  ;;  %v1671_v61 = vpop.xlane.xlu1 %1670 }
 0x734   :  { %v1697_v46 = vmul.f32 0.0078125, %v1671_v61  ;;  %v1673_v52 = vpop.xlane.xlu0 %1672  ;;  %v1731_v10 = vmul.f32 %v3405_v2, %v3405_v2 }
 0x735   :  { %v1698_v1 = vmul.f32 0.0078125, %v1673_v52  ;;  %1742 = vadd.xlane.f32.xlu1 %v1725_v12  ;;  %v1728_v45 = vmul.f32 %v3408_v41, %v3408_v41  ;;  %v3518_v12 = vld [vmem:[%s3614_s5 + $0x38] sm:$0xff] }
 0x736   :  { %v3415_v5 = vsub.f32 %v3357_v60, %v1697_v46 }
 0x737   :  { %v3418_v4 = vsub.f32 %v3359_v31, %v1698_v1  ;;  %1748 = vadd.xlane.f32.xlu0 %v1728_v45  ;;  %v1683_v36 = vpop.xlane.xlu1 %1682 }
 0x738   :  { %v1703_v49 = vmul.f32 0.0078125, %v1683_v36  ;;  %v1677_v44 = vpop.xlane.xlu0 %1676  ;;  %v1729_v19 = vmul.f32 %v3415_v5, %v3415_v5 }
 0x739   :  { %v1700_v11 = vmul.f32 0.0078125, %v1677_v44  ;;  %1754 = vadd.xlane.f32.xlu1 %v1731_v10  ;;  %v1730_v51 = vmul.f32 %v3418_v4, %v3418_v4 }
 0x73a   :  { %v3425_v55 = vsub.f32 %v3363_v3, %v1703_v49 }
 0x73b   :  { %v3428_v60 = vsub.f32 %v3365_v17, %v1700_v11  ;;  %1752 = vadd.xlane.f32.xlu0 %v1730_v51  ;;  %v1679_v31 = vpop.xlane.xlu1 %1678 }
 0x73c   :  { %v1701_v18 = vmul.f32 0.0078125, %v1679_v31  ;;  %v1681_v47 = vpop.xlane.xlu0 %1680  ;;  %v1735_v17 = vmul.f32 %v3425_v55, %v3425_v55 }
 0x73d   :  { %v1702_v23 = vmul.f32 0.0078125, %v1681_v47  ;;  %1750 = vadd.xlane.f32.xlu1 %v1729_v19  ;;  %v1732_v48 = vmul.f32 %v3428_v60, %v3428_v60 }
 0x73e   :  { %v3435_v34 = vsub.f32 %v3369_v25, %v1701_v18 }
 0x73f   :  { %v3438_v3 = vsub.f32 %v3371_v63, %v1702_v23  ;;  %1756 = vadd.xlane.f32.xlu0 %v1732_v48  ;;  %v1691_v16 = vpop.xlane.xlu1 %1690 }
 0x740   :  { %v1685_v42 = vpop.xlane.xlu0 %1684  ;;  %v1733_v25 = vmul.f32 %v3435_v34, %v3435_v34  ;;  %v1707_v15 = vmul.f32 0.0078125, %v1691_v16 }
 0x741   :  { %v1704_v30 = vmul.f32 0.0078125, %v1685_v42  ;;  %1762 = vadd.xlane.f32.xlu1 %v1735_v17  ;;  %v1734_v33 = vmul.f32 %v3438_v3, %v3438_v3 }
 0x742   :  { %v3506_v8 = vsub.f32 %v3375_v22, %v1707_v15  ;;  %v3525_v22 = vld [vmem:[%s3614_s5 + $0x50] sm:$0xff] }
 0x743   :  { %v3445_v29 = vsub.f32 %v3377_v54, %v1704_v30  ;;  %1760 = vadd.xlane.f32.xlu0 %v1734_v33  ;;  %v3459_v54 = vld [vmem:[%s3614_s5] sm:$0xff]  ;;  %v1687_v20 = vpop.xlane.xlu1 %1686 }
 0x744   :  { %v1689_v7 = vpop.xlane.xlu0 %1688  ;;  %v1705_v24 = vmul.f32 0.0078125, %v1687_v20  ;;  %v1739_v57 = vmul.f32 %v3506_v8, %v3506_v8 }
 0x745   :  { %v1706_v63 = vmul.f32 0.0078125, %v1689_v7  ;;  %1758 = vadd.xlane.f32.xlu1 %v1733_v25  ;;  %v1736_v40 = vmul.f32 %v3445_v29, %v3445_v29 }
 0x746   :  { %v3509_v35 = vsub.f32 %v3381_v50, %v1705_v24 }
 0x747   :  { %v3452_v27 = vsub.f32 %v3383_v26, %v1706_v63  ;;  %1764 = vadd.xlane.f32.xlu0 %v1736_v40  ;;  %v3471_v26 = vld [vmem:[%s3614_s5 + $0x10] sm:$0xff] }
 0x748   :  { %v1737_v61 = vmul.f32 %v3509_v35, %v3509_v35 }
 0x749   :  { %v1738_v56 = vmul.f32 %v3452_v27, %v3452_v27 }
 0x74b   :  { %1768 = vadd.xlane.f32.xlu0 %v1738_v56 }
 0x756   :  { %1933 = vperm.xlu1 %2312, %v3459_v54  }
 0x75a   :  { %1937 = vperm.xlu1 %2312, %v3465_v21  }
 0x75e   :  { %1941 = vperm.xlu1 %2312, %v3471_v26  }
 0x761   :  { %1949 = vperm.xlu0 %2313, %v3477_v53  }
 0x762   :  { %1945 = vperm.xlu1 %2312, %v3483_v62  }
 0x765   :  { %1965 = vperm.xlu0 %2313, %v3489_v28  }
 0x766   :  { %1953 = vperm.xlu1 %2312, %v3495_v37  }
 0x769   :  { %2315 = vset.pattern.permute.xlu0 %v2495_v6 }
 0x76a   :  { %1957 = vperm.xlu1 %2312, %v3502_v58  }
 0x78e   :  { %1770 = vadd.xlane.f32.xlu1 %v1739_v57 }
 0x792   :  { %1766 = vadd.xlane.f32.xlu1 %v1737_v61 }
 0x7a3   :  { %1961 = vperm.xlu1 %2312, %v3518_v12  }
 0x7a7   :  { %1969 = vperm.xlu1 %2312, %v3243_v38  }
 0x7ab   :  { %1973 = vperm.xlu1 %2312, %v3525_v22  }
 0x7af   :  { %1977 = vperm.xlu1 %2312, %v3250_v9  }
 0x7b3   :  { %2314 = vset.pattern.permute.xlu1 %v2495_v6 }
 0x7ba   :  { %v1741_v50 = vpop.xlane.xlu0 %1740 }
 0x7bb   :  { %v1772_v46 = vmul.f32 0.0078125, %v1741_v50 }
 0x7bd   :  { %v1788_v52 = vadd.f32 1e-05, %v1772_v46  ;;  %v2460_v46 = vld [vmem:[%s3614_s5 + $0x60] sm:$0xff] }
 0x7be   :  { %v1747_v1 = vpop.xlane.xlu1 %1746 }
 0x7bf   :  { %2402 = vrsqrt.f32 %v1788_v52  ;;  %v1775_v44 = vmul.f32 0.0078125, %v1747_v1 }
 0x7c0   :  { %v1745_v45 = vpop.xlane.xlu0 %1744 }
 0x7c1   :  { %v1774_v36 = vmul.f32 0.0078125, %v1745_v45  ;;  %v1791_v48 = vadd.f32 1e-05, %v1775_v44 }
 0x7c2   :  { %v1743_v10 = vpop.xlane.xlu1 %1742 }
 0x7c3   :  { %v1790_v38 = vadd.f32 1e-05, %v1774_v36  ;;  %v1773_v18 = vmul.f32 0.0078125, %v1743_v10 }
 0x7c4   :  { %v1749_v49 = vpop.xlane.xlu0 %1748 }
 0x7c5   :  { %2404 = vrsqrt.f32 %v1790_v38  ;;  %v1776_v11 = vmul.f32 0.0078125, %v1749_v49  ;;  %v1789_v33 = vadd.f32 1e-05, %v1773_v18 }
 0x7c6   :  { %v1755_v51 = vpop.xlane.xlu1 %1754 }
 0x7c7   :  { %v1792_v31 = vadd.f32 1e-05, %v1776_v11  ;;  %v1779_v19 = vmul.f32 0.0078125, %v1755_v51 }
 0x7c8   :  { %v1753_v47 = vpop.xlane.xlu0 %1752 }
 0x7c9   :  { %v2403_v23 = vpop.eup %2402  ;;  %2406 = vrsqrt.f32 %v1792_v31  ;;  %v1795_v17 = vadd.f32 1e-05, %v1779_v19  ;;  %v1778_v7 = vmul.f32 0.0078125, %v1753_v47 }
 0x7ca   :  { %v1751_v42 = vpop.xlane.xlu1 %1750  ;;  %v1820_v30 = vmul.f32 %v3459_v54, %v2403_v23 }
 0x7cb   :  { %2408 = vrsqrt.f32 %v1795_v17  ;;  %v1777_v20 = vmul.f32 0.0078125, %v1751_v42  ;;  %v1794_v61 = vadd.f32 1e-05, %v1778_v7 }
 0x7cc   :  { %1838 = vperm.xlu0 %2315, %v1820_v30   ;;  %v1757_v25 = vpop.xlane.xlu0 %1756  ;;  %2410 = vrsqrt.f32 %v1791_v48 }
 0x7cd   :  { %v1780_v63 = vmul.f32 0.0078125, %v1757_v25  ;;  %2412 = vrsqrt.f32 %v1789_v33  ;;  %v1793_v1 = vadd.f32 1e-05, %v1777_v20 }
 0x7ce   :  { %v1763_v40 = vpop.xlane.xlu1 %1762 }
 0x7cf   :  { %v2405_v56 = vpop.eup %2404  ;;  %v1796_v16 = vadd.f32 1e-05, %v1780_v63  ;;  %v1783_v15 = vmul.f32 0.0078125, %v1763_v40 }
 0x7d0   :  { %2316 = vset.pattern.permute.xlu0 %v2494_v14  ;;  %v1761_v24 = vpop.xlane.xlu0 %1760  ;;  %v1822_v57 = vmul.f32 %v3471_v26, %v2405_v56 }
 0x7d1   :  { %2414 = vrsqrt.f32 %v1796_v16  ;;  %v1799_v50 = vadd.f32 1e-05, %v1783_v15  ;;  %1981 = vperm.xlu0 %2316, %v2460_v46   ;;  %v1782_v38 = vmul.f32 0.0078125, %v1761_v24  ;;  %v2496_v16 = vmov 0.0  }
 0x7d2   :  { %1848 = vperm.xlu1 %2314, %v1822_v57   ;;  %v1759_v26 = vpop.xlane.xlu1 %1758  ;;  %2234 = vmatprep.subr.bf16.mxu0 %v2496_v16 }
 0x7d3   :  { %v2407_v52 = vpop.eup %2406  ;;  %2416 = vrsqrt.f32 %v1799_v50  ;;  %v1798_v31 = vadd.f32 1e-05, %v1782_v38  ;;  %v1781_v19 = vmul.f32 0.0078125, %v1759_v26  ;;  %2250 = vmatprep.mubr.msk.bf16.mxu0 %vm2497_vm0, %v2496_v16 }
 0x7d4   :  { %v1765_v45 = vpop.xlane.xlu0 %1764  ;;  %v1824_v36 = vmul.f32 %v3477_v53, %v2407_v52  ;;  %2418 = vrsqrt.f32 %v1794_v61 }
 0x7d5   :  { %v2409_v10 = vpop.eup %2408  ;;  %v1784_v49 = vmul.f32 0.0078125, %v1765_v45  ;;  %2319 = vset.pattern.permute.xlu0 %v2495_v6  ;;  %2420 = vrsqrt.f32 %v1793_v1  ;;  %v1797_v42 = vadd.f32 1e-05, %v1781_v19 }
 0x7d6   :  { %1858 = vperm.xlu0 %2319, %v1824_v36   ;;  %2317 = vset.pattern.permute.xlu1 %v2494_v14  ;;  %v2411_v44 = vpop.eup %2410  ;;  %v1827_v51 = vmul.f32 %v3518_v12, %v2409_v10  ;;  %v1934_v57 = vpop.permute.xlu1 %1933 }
 0x7d7   :  { %v1800_v11 = vadd.f32 1e-05, %v1784_v49  ;;  %1985 = vperm.xlu1 %2317, %v3266_v13   ;;  %v2413_v53 = vpop.eup %2412  ;;  %v1823_v47 = vmul.f32 %v3483_v62, %v2411_v44 }
 0x7d8   :  { %v1769_v18 = vpop.xlane.xlu0 %1768  ;;  %v1821_v12 = vmul.f32 %v3465_v21, %v2413_v53  ;;  %v2498_v53 = vmov 9  }
 0x7d9   :  { %2422 = vrsqrt.f32 %v1800_v11  ;;  %v1786_v30 = vmul.f32 0.0078125, %v1769_v18 }
 0x7da   :  { %1873 = vperm.xlu0 %2319, %v1827_v51   ;;  %2424 = vrsqrt.f32 %v1798_v31  ;;  %v1938_v61 = vpop.permute.xlu1 %1937 }
 0x7db   :  { %v2415_v23 = vpop.eup %2414  ;;  %2318 = vset.pattern.permute.xlu1 %v2495_v6  ;;  %2426 = vrsqrt.f32 %v1797_v42  ;;  %v1802_v7 = vadd.f32 1e-05, %v1786_v30 }
 0x7dc   :  { %1853 = vperm.xlu1 %2318, %v1823_v47   ;;  %v1828_v48 = vmul.f32 %v3489_v28, %v2415_v23 }
 0x7dd   :  { %v2417_v17 = vpop.eup %2416  ;;  %2428 = vrsqrt.f32 %v1802_v7 }
 0x7de   :  { %1878 = vperm.xlu0 %2319, %v1828_v48   ;;  %v2419_v33 = vpop.eup %2418  ;;  %v1831_v25 = vmul.f32 %v3250_v9, %v2417_v17  ;;  %v1942_v50 = vpop.permute.xlu1 %1941 }
 0x7df   :  { %v2421_v62 = vpop.eup %2420  ;;  %v1826_v6 = vmul.f32 %v3502_v58, %v2419_v33  ;;  %v2461_v58 = vld [vmem:[%s3614_s5 + $0x48] sm:$0xff] }
 0x7e0   :  { %1843 = vperm.xlu1 %2318, %v1821_v12   ;;  %v1825_v40 = vmul.f32 %v3495_v37, %v2421_v62  ;;  %v2462_v37 = vld [vmem:[%s3614_s5 + $0x70] sm:$0xff]  ;;  %v1950_v18 = vpop.permute.xlu0 %1949 }
 0x7e2   :  { %1893 = vperm.xlu0 %2319, %v1831_v25  }
 0x7e3   :  { %v2423_v63 = vpop.eup %2422 }
 0x7e4   :  { %1868 = vperm.xlu1 %2318, %v1826_v6   ;;  %v1832_v28 = vmul.f32 %v2460_v46, %v2423_v63  ;;  %v2425_v56 = vpop.eup %2424  ;;  %v1946_v46 = vpop.permute.xlu1 %1945 }
 0x7e5   :  { %v1830_v9 = vmul.f32 %v3525_v22, %v2425_v56  ;;  %v2427_v21 = vpop.eup %2426  ;;  %v1966_v23 = vpop.permute.xlu0 %1965 }
 0x7e6   :  { %1898 = vperm.xlu0 %2319, %v1832_v28   ;;  %v1829_v15 = vmul.f32 %v2461_v58, %v2427_v21 }
 0x7e7   :  { %v2429_v20 = vpop.eup %2428 }
 0x7e8   :  { %1863 = vperm.xlu1 %2318, %v1825_v40   ;;  %v1834_v24 = vmul.f32 %v2462_v37, %v2429_v20  ;;  %v3556_v22 = vpop.permute.xlu1 %1953 }
 0x7ec   :  { %1888 = vperm.xlu1 %2318, %v1830_v9   ;;  %v1958_v52 = vpop.permute.xlu1 %1957 }
 0x7f0   :  { %1883 = vperm.xlu1 %2318, %v1829_v15  }
 0x7f4   :  { %1908 = vperm.xlu1 %2318, %v1834_v24  }
 0x81b   :  { %v1771_v1 = vpop.xlane.xlu1 %1770 }
 0x81c   :  { %v1787_v45 = vmul.f32 0.0078125, %v1771_v1 }
 0x81e   :  { %v1803_v36 = vadd.f32 1e-05, %v1787_v45 }
 0x81f   :  { %v1767_v10 = vpop.xlane.xlu1 %1766 }
 0x820   :  { %2430 = vrsqrt.f32 %v1803_v36  ;;  %v1785_v38 = vmul.f32 0.0078125, %v1767_v10 }
 0x822   :  { %v1801_v49 = vadd.f32 1e-05, %v1785_v38 }
 0x823   :  { %v1962_v31 = vpop.permute.xlu1 %1961 }
 0x824   :  { %2432 = vrsqrt.f32 %v1801_v49 }
 0x827   :  { %v1970_v19 = vpop.permute.xlu1 %1969 }
 0x82a   :  { %v2431_v26 = vpop.eup %2430 }
 0x82b   :  { %v1835_v44 = vmul.f32 %v3280_v39, %v2431_v26  ;;  %v1974_v47 = vpop.permute.xlu1 %1973 }
 0x82d   :  { %1913 = vperm.xlu0 %2319, %v1835_v44  }
 0x82e   :  { %v2433_v11 = vpop.eup %2432 }
 0x82f   :  { %v1833_v51 = vmul.f32 %v3266_v13, %v2433_v11  ;;  %v1978_v48 = vpop.permute.xlu1 %1977 }
 0x831   :  { %1903 = vperm.xlu1 %2318, %v1833_v51   ;;  %2321 = vset.pattern.permute.xlu0 %v2498_v53 }
 0x832   :  { %2038 = vperm.xlu0 %2321, %v3459_v54  }
 0x835   :  { %2320 = vset.pattern.permute.xlu1 %v2494_v14 }
 0x836   :  { %1989 = vperm.xlu1 %2320, %v2462_v37  }
 0x83a   :  { %1993 = vperm.xlu1 %2320, %v3280_v39  }
 0x84b   :  { %v1839_v13 = vpop.permute.xlu0 %1838 }
 0x84c   :  { %v1916_v12 = vmul.f32 %v1839_v13, %v3389_v59 }
 0x84e   :  { %v1996_v7 = vadd.f32 %v1934_v57, %v1916_v12 }
 0x850   :  { %v3564_v42 = vpop.permute.xlu0 %1981  ;;  %v2012_v56 = vmax.f32 %v1996_v7, 0.0 }
 0x851   :  { %v1849_v17 = vpop.permute.xlu1 %1848 }
 0x852   :  { %v1918_v62 = vmul.f32 %v1849_v17, %v3398_v0 }
 0x854   :  { %v1998_v9 = vadd.f32 %v1942_v50, %v1918_v62 }
 0x855   :  { %v1859_v39 = vpop.permute.xlu0 %1858 }
 0x856   :  { %v3566_v14 = vpop.permute.xlu1 %1985  ;;  %v1920_v21 = vmul.f32 %v1859_v39, %v3408_v41  ;;  %v2014_v24 = vmax.f32 %v1998_v9, 0.0 }
 0x858   :  { %v2000_v57 = vadd.f32 %v1950_v18, %v1920_v21 }
 0x859   :  { %v1874_v6 = vpop.permute.xlu0 %1873 }
 0x85a   :  { %v1923_v0 = vmul.f32 %v1874_v6, %v3405_v2  ;;  %v2016_v1 = vmax.f32 %v2000_v57, 0.0 }
 0x85b   :  { %v1854_v30 = vpop.permute.xlu1 %1853 }
 0x85c   :  { %v1919_v33 = vmul.f32 %v1854_v30, %v3393_v32  ;;  %v2003_v45 = vadd.f32 %v1962_v31, %v1923_v0 }
 0x85d   :  { %v1879_v32 = vpop.permute.xlu0 %1878 }
 0x85e   :  { %v1999_v63 = vadd.f32 %v1946_v46, %v1919_v33  ;;  %v2019_v26 = vmax.f32 %v2003_v45, 0.0 }
 0x85f   :  { %v1844_v25 = vpop.permute.xlu1 %1843 }
 0x860   :  { %v1917_v54 = vmul.f32 %v1844_v25, %v3396_v43  ;;  %v2015_v15 = vmax.f32 %v1999_v63, 0.0 }
 0x861   :  { %v1894_v10 = vpop.permute.xlu0 %1893 }
 0x862   :  { %v1997_v28 = vadd.f32 %v1938_v61, %v1917_v54  ;;  %v2029_v61 = vpack.c.bf16 %v2015_v15, %v2014_v24 }
 0x863   :  { %v1869_v40 = vpop.permute.xlu1 %1868 }
 0x864   :  { %v2013_v58 = vmax.f32 %v1997_v28, 0.0  ;;  %v1922_v59 = vmul.f32 %v1869_v40, %v3418_v4  ;;  %v1924_v4 = vmul.f32 %v1879_v32, %v3428_v60 }
 0x866   :  { %v2028_v20 = vpack.c.bf16 %v2013_v58, %v2012_v56  ;;  %v2002_v50 = vadd.f32 %v1958_v52, %v1922_v59  ;;  %v2004_v44 = vadd.f32 %v1966_v23, %v1924_v4  ;;  %v1927_v52 = vmul.f32 %v1894_v10, %v3425_v55 }
 0x867   :  { %v1864_v37 = vpop.permute.xlu1 %1863 }
 0x868   :  { %v1921_v43 = vmul.f32 %v1864_v37, %v3415_v5  ;;  %2235 = vmatpush3.bf16.msra.mxu0 %v2028_v20  ;;  %v2018_v2 = vmax.f32 %v2002_v50, 0.0  ;;  %v2020_v31 = vmax.f32 %v2004_v44, 0.0  ;;  %v2007_v53 = vadd.f32 %v1978_v48, %v1927_v52 }
 0x869   :  { %2236 = vmatprep.subr.bf16.mxu0 %v2496_v16 }
 0x86a   :  { %v2001_v41 = vadd.f32 %v3556_v22, %v1921_v43  ;;  %v2031_v60 = vpack.c.bf16 %v2019_v26, %v2018_v2  ;;  %v2023_v17 = vmax.f32 %v2007_v53, 0.0 }
 0x86b   :  { %v1889_v46 = vpop.permute.xlu1 %1888 }
 0x86c   :  { %v2017_v36 = vmax.f32 %v2001_v41, 0.0  ;;  %2237 = vmatpush3.bf16.msra.mxu0 %v2029_v61  ;;  %v1926_v5 = vmul.f32 %v1889_v46, %v3438_v3 }
 0x86d   :  { %2238 = vmatprep.subr.bf16.mxu0 %v2496_v16 }
 0x86e   :  { %v2030_v38 = vpack.c.bf16 %v2017_v36, %v2016_v1  ;;  %v2006_v11 = vadd.f32 %v1974_v47, %v1926_v5 }
 0x86f   :  { %v1884_v49 = vpop.permute.xlu1 %1883 }
 0x870   :  { %v1925_v22 = vmul.f32 %v1884_v49, %v3435_v34  ;;  %2239 = vmatpush3.bf16.msra.mxu0 %v2030_v38  ;;  %v2022_v3 = vmax.f32 %v2006_v11, 0.0  ;;  %v1899_v34 = vpop.permute.xlu0 %1898 }
 0x871   :  { %2240 = vmatprep.subr.bf16.mxu0 %v2496_v16 }
 0x872   :  { %v2005_v51 = vadd.f32 %v1970_v19, %v1925_v22  ;;  %v2033_v55 = vpack.c.bf16 %v2023_v17, %v2022_v3  ;;  %v1928_v19 = vmul.f32 %v1899_v34, %v3445_v29 }
 0x873   :  { %v1909_v23 = vpop.permute.xlu1 %1908 }
 0x874   :  { %v2021_v18 = vmax.f32 %v2005_v51, 0.0  ;;  %2241 = vmatpush3.bf16.msra.mxu0 %v2031_v60  ;;  %v2008_v48 = vadd.f32 %v3564_v42, %v1928_v19  ;;  %v1930_v62 = vmul.f32 %v1909_v23, %v3452_v27 }
 0x875   :  { %2242 = vmatprep.subr.bf16.mxu0 %v2496_v16 }
 0x876   :  { %v2032_v13 = vpack.c.bf16 %v2021_v18, %v2020_v31  ;;  %v2024_v12 = vmax.f32 %v2008_v48, 0.0 }
 0x878   :  { %2243 = vmatpush3.bf16.msra.mxu0 %v2032_v13 }
 0x879   :  { %2244 = vmatprep.subr.bf16.mxu0 %v2496_v16 }
 0x87c   :  { %2245 = vmatpush3.bf16.msra.mxu0 %v2033_v55 }
 0x87d   :  { %2246 = vmatprep.subr.bf16.mxu0 %v2496_v16 }
 0x8ac   :  { %v1914_v33 = vpop.permute.xlu0 %1913 }
 0x8ad   :  { %v1931_v6 = vmul.f32 %v1914_v33, %v3506_v8 }
 0x8b0   :  { %v1904_v47 = vpop.permute.xlu1 %1903 }
 0x8b1   :  { %v1929_v39 = vmul.f32 %v1904_v47, %v3509_v35  ;;  %v2039_v56 = vpop.permute.xlu0 %2038 }
 0x8b3   :  { %v2009_v30 = vadd.f32 %v3566_v14, %v1929_v39  ;;  %v2036_v14 = vld [vmem:[%s3613_s4] sm:$0x1] }
 0x8b5   :  { %v2025_v25 = vmax.f32 %v2009_v30, 0.0  ;;  %v1990_v7 = vpop.permute.xlu1 %1989 }
 0x8b6   :  { %v2010_v63 = vadd.f32 %v1990_v7, %v1930_v62 }
 0x8b7   :  { %v2034_v54 = vpack.c.bf16 %v2025_v25, %v2024_v12 }
 0x8b8   :  { %v2026_v42 = vmax.f32 %v2010_v63, 0.0 }
 0x8b9   :  { %2247 = vmatpush3.bf16.msra.mxu0 %v2034_v54  ;;  %v1994_v28 = vpop.permute.xlu1 %1993 }
 0x8ba   :  { %v2011_v29 = vadd.f32 %v1994_v28, %v1931_v6  ;;  %2248 = vmatprep.subr.bf16.mxu0 %v2496_v16 }
 0x8bc   :  { %v2027_v40 = vmax.f32 %v2011_v29, 0.0 }
 0x8be   :  { %v2035_v35 = vpack.c.bf16 %v2027_v40, %v2026_v42 }
 0x8c0   :  { %2249 = vmatpush3.bf16.msra.mxu0 %v2035_v35 }
 0x8c3   :  { %2251 = vmatmul.mubr.bf16.vlgmr.msra.gmra.mrb[16].mxu0 %v2036_v14 }
 0x996   :  { %v2075_v27 = vpop.f32.mrb[16].mxu0 }
 0x997   :  { %v2076_v8 = vadd.f32 %v2075_v27, %v2039_v56  ;;  %v2252_v9 = vpop.f32.mrb[17].mxu0 }
 0x998   :  { %v2078_v21 = vpop.f32.mrb[18].mxu0 }
 0x999   :  { %2081 = vst [vmem:[#allocation2] sm:$0x3] %v2076_v8  ;;  %v2253_v58 = vpop.f32.mrb[19].mxu0 }
 0x99a   :  { %2474 = shalt.err (!%p2471_p4)
}
 0x99b   :  { %s2475_s26 = scalar_lea.hbm %s3615_s6, 32 }
 0x99c   :  { %p2476_p5 = scmp.ne.s32.totalorder %s3615_s6, %s2475_s26  ;;  %p2479_p6 = scmp.lt.u32.totalorder %s2475_s26, %s3615_s6 }
 0x99e   :  { %p2481_p7 = pnand %p2479_p6, %p2476_p5 }
 0x9a0   :  { %2484 = shalt.err (!%p2481_p7)
}
 0x9a1   :  { %2091 = dma.vmem_to_hbm [thread:$0]  %s2089_s3, 32, %s3615_s6, [#allocation3]  }
 0x9a2   :  { %2485 = dma.done.wait [#allocation3], 32  }
 0x9a3   :  { %2486 = vsyncadd [#allocation3], 4294967264 }
 0x9a4   :  { %2095 = vsyncpa [#allocation3], 1 }

</bundles_post_ra>
